<compile_context>
chip_gen: v7x
topology: tpu7x:2x2x1
jax: 0.10.0
libtpu: 0.0.40
codegen_flags: <defaults>
</compile_context>

<pallas_src>
import functools

import jax
import jax.numpy as jnp
from jax import lax
from jax.experimental import pallas as pl
from jax.experimental.pallas import tpu as pltpu


# ----------------------------------------------------------------------------
# Shared conv core: halo-pad into VMEM scratch, im2col, single bf16 MXU matmul.
# ----------------------------------------------------------------------------
def _conv3x3_im2col(y, ypad_ref, w_ref, stride):
    """y: (H, W, C) f32 activated input; ypad_ref: (H+2, W+2, C) f32 VMEM scratch;
    w_ref: (9*C, Cout) bf16.  Returns (Ho*Wo, Cout) f32 (bias not included)."""
    H, W, C = y.shape

    # Zero only the 1-pixel halo; the interior is fully overwritten just below.  Done every
    # grid step (cheap thin strips) rather than once at program_id == 0, so the scratch
    # contents never depend on how the "parallel" batch axis is split across TensorCores.
    ypad_ref[0:1, :, :] = jnp.zeros((1, W + 2, C), y.dtype)
    ypad_ref[H + 1:H + 2, :, :] = jnp.zeros((1, W + 2, C), y.dtype)
    ypad_ref[:, 0:1, :] = jnp.zeros((H + 2, 1, C), y.dtype)
    ypad_ref[:, W + 1:W + 2, :] = jnp.zeros((H + 2, 1, C), y.dtype)
    ypad_ref[1:H + 1, 1:W + 1, :] = y

    # im2col: concatenate the 9 shifted views along the channel (lane) axis so the 3x3 conv
    # becomes a single MXU matmul with K = 9*C (tap order dh*3+dw matches the weight reshape).
    taps = [ypad_ref[dh:dh + H, dw:dw + W, :] for dh in range(3) for dw in range(3)]
    col = jnp.concatenate(taps, axis=-1)                          # (H, W, 9*C)
    if stride != 1:
        # Direct strided evaluation: keep only output-resolution rows/cols of the slab
        # before the matmul (stride^2 x fewer MXU FLOPs than conv-then-subsample).
        col = col[::stride, ::stride, :]
    Ho, Wo = col.shape[0], col.shape[1]
    col = col.reshape(Ho * Wo, 9 * C).astype(jnp.bfloat16)
    return jnp.dot(col, w_ref[...], preferred_element_type=jnp.float32)


# ----------------------------------------------------------------------------
# Kernel 1: fused (eval) BN1 -> ReLU -> 3x3 conv (stride 1, pad 1) + bias
# ----------------------------------------------------------------------------
def _bn_relu_conv1_kernel(x_ref, scale_ref, shift_ref, w_ref, b_ref, o_ref, ypad_ref):
    # out = conv3x3_s1(relu(bn1(x))) + b      (dropout(p=0) == identity)
    H, W, Cout = o_ref.shape[1], o_ref.shape[2], o_ref.shape[3]
    y = jnp.maximum(x_ref[0] * scale_ref[...] + shift_ref[...], 0.0)   # f32 on the VPU
    acc = _conv3x3_im2col(y, ypad_ref, w_ref, 1) + b_ref[...]          # (H*W, Cout) f32
    o_ref[0] = acc.reshape(H, W, Cout).astype(o_ref.dtype)


# ----------------------------------------------------------------------------
# Kernel 2a: fused BN2 -> ReLU -> 3x3 conv (stride 1) + bias + identity residual
# ----------------------------------------------------------------------------
def _bn_relu_conv2_identity_kernel(h_ref, x_ref, scale_ref, shift_ref, w_ref, b_ref,
                                   o_ref, ypad_ref):
    # out = conv3x3_s1(relu(bn2(h))) + b + x        (identity shortcut, stride == 1)
    H, W, Cout = o_ref.shape[1], o_ref.shape[2], o_ref.shape[3]
    y = jnp.maximum(h_ref[0] * scale_ref[...] + shift_ref[...], 0.0)
    acc = _conv3x3_im2col(y, ypad_ref, w_ref, 1) + b_ref[...]
    o_ref[0] = (acc.reshape(H, W, Cout) + x_ref[0]).astype(o_ref.dtype)


# ----------------------------------------------------------------------------
# Kernel 2b: fused BN2 -> ReLU -> 3x3 conv (stride s) + bias + 1x1 projection shortcut
# ----------------------------------------------------------------------------
def _bn_relu_conv2_projection_kernel(stride, h_ref, xs_ref, scale_ref, shift_ref,
                                     w_ref, b_ref, wsc_ref, bsc_ref, o_ref, ypad_ref):
    # out = conv3x3_s(relu(bn2(h))) + b + (conv1x1_s(x) + bsc)
    Ho, Wo, Cout = o_ref.shape[1], o_ref.shape[2], o_ref.shape[3]
    Cin = xs_ref.shape[3]
    y = jnp.maximum(h_ref[0] * scale_ref[...] + shift_ref[...], 0.0)
    main = _conv3x3_im2col(y, ypad_ref, w_ref, stride) + b_ref[...]    # (Ho*Wo, Cout) f32
    sc = jnp.dot(xs_ref[0].reshape(Ho * Wo, Cin).astype(jnp.bfloat16), wsc_ref[...],
                 preferred_element_type=jnp.float32) + bsc_ref[...]
    o_ref[0] = (main + sc).reshape(Ho, Wo, Cout).astype(o_ref.dtype)


# ----------------------------------------------------------------------------
# pallas_call wrappers (grid over batch, batch axis parallel across TensorCores)
# ----------------------------------------------------------------------------
def bn_relu_conv1(x, scale, shift, w9, b):
    """x: (N,H,W,Cin) f32; scale/shift: (1,Cin); w9: (9*Cin,Cout) bf16; b: (1,Cout)."""
    N, H, W, Cin = x.shape
    Cout = w9.shape[-1]
    return pl.pallas_call(
        _bn_relu_conv1_kernel,
        out_shape=jax.ShapeDtypeStruct((N, H, W, Cout), x.dtype),
        grid=(N,),
        in_specs=[
            pl.BlockSpec((1, H, W, Cin), lambda n: (n, 0, 0, 0)),
            pl.BlockSpec((1, Cin), lambda n: (0, 0)),
            pl.BlockSpec((1, Cin), lambda n: (0, 0)),
            pl.BlockSpec((9 * Cin, Cout), lambda n: (0, 0)),
            pl.BlockSpec((1, Cout), lambda n: (0, 0)),
        ],
        out_specs=pl.BlockSpec((1, H, W, Cout), lambda n: (n, 0, 0, 0)),
        scratch_shapes=[pltpu.VMEM((H + 2, W + 2, Cin), jnp.float32)],
        compiler_params=pltpu.CompilerParams(dimension_semantics=("parallel",)),
    )(x, scale, shift, w9, b)


def bn_relu_conv2_identity(h, x, scale, shift, w9, b):
    """Fused BN2+ReLU+conv2(stride 1)+bias + identity residual add."""
    N, H, W, Cmid = h.shape
    Cout = w9.shape[-1]
    return pl.pallas_call(
        _bn_relu_conv2_identity_kernel,
        out_shape=jax.ShapeDtypeStruct((N, H, W, Cout), h.dtype),
        grid=(N,),
        in_specs=[
            pl.BlockSpec((1, H, W, Cmid), lambda n: (n, 0, 0, 0)),
            pl.BlockSpec((1, H, W, Cout), lambda n: (n, 0, 0, 0)),
            pl.BlockSpec((1, Cmid), lambda n: (0, 0)),
            pl.BlockSpec((1, Cmid), lambda n: (0, 0)),
            pl.BlockSpec((9 * Cmid, Cout), lambda n: (0, 0)),
            pl.BlockSpec((1, Cout), lambda n: (0, 0)),
        ],
        out_specs=pl.BlockSpec((1, H, W, Cout), lambda n: (n, 0, 0, 0)),
        scratch_shapes=[pltpu.VMEM((H + 2, W + 2, Cmid), jnp.float32)],
        compiler_params=pltpu.CompilerParams(dimension_semantics=("parallel",)),
    )(h, x, scale, shift, w9, b)


def bn_relu_conv2_projection(h, xs, scale, shift, w9, b, wsc, bsc, stride):
    """Fused BN2+ReLU+conv2(stride)+bias + 1x1 projection shortcut + residual add."""
    N, H, W, Cmid = h.shape
    _, Ho, Wo, Cin = xs.shape
    Cout = w9.shape[-1]
    kernel = functools.partial(_bn_relu_conv2_projection_kernel, stride)
    return pl.pallas_call(
        kernel,
        out_shape=jax.ShapeDtypeStruct((N, Ho, Wo, Cout), h.dtype),
        grid=(N,),
        in_specs=[
            pl.BlockSpec((1, H, W, Cmid), lambda n: (n, 0, 0, 0)),
            pl.BlockSpec((1, Ho, Wo, Cin), lambda n: (n, 0, 0, 0)),
            pl.BlockSpec((1, Cmid), lambda n: (0, 0)),
            pl.BlockSpec((1, Cmid), lambda n: (0, 0)),
            pl.BlockSpec((9 * Cmid, Cout), lambda n: (0, 0)),
            pl.BlockSpec((1, Cout), lambda n: (0, 0)),
            pl.BlockSpec((Cin, Cout), lambda n: (0, 0)),
            pl.BlockSpec((1, Cout), lambda n: (0, 0)),
        ],
        out_specs=pl.BlockSpec((1, Ho, Wo, Cout), lambda n: (n, 0, 0, 0)),
        scratch_shapes=[pltpu.VMEM((H + 2, W + 2, Cmid), jnp.float32)],
        compiler_params=pltpu.CompilerParams(dimension_semantics=("parallel",)),
    )(h, xs, scale, shift, w9, b, wsc, bsc)


# ----------------------------------------------------------------------------
# wide_basic forward (wrapper; hot paths are the two fused Pallas kernels)
# ----------------------------------------------------------------------------
def wide_basic_forward(params, x_nchw, stride=1, dropout_rate=0.0, eps=1e-5):
    assert dropout_rate == 0.0, "only p=0 dropout (identity) implemented"
    x = jnp.transpose(x_nchw, (0, 2, 3, 1)).astype(jnp.float32)   # NCHW -> NHWC
    N, H, W, in_planes = x.shape
    planes = params["conv1_w"].shape[-1]

    # Fold eval-mode BN into per-channel affine (scale, shift).
    s1 = params["bn1_gamma"] / jnp.sqrt(params["bn1_var"] + eps)
    t1 = params["bn1_beta"] - params["bn1_mean"] * s1
    s2 = params["bn2_gamma"] / jnp.sqrt(params["bn2_var"] + eps)
    t2 = params["bn2_beta"] - params["bn2_mean"] * s2

    # bf16 weights for the MXU (f32 accumulation inside the kernels).
    w1 = params["conv1_w"].reshape(9 * in_planes, planes).astype(jnp.bfloat16)
    w2 = params["conv2_w"].reshape(9 * planes, planes).astype(jnp.bfloat16)
    b1 = params["conv1_b"].reshape(1, -1)
    b2 = params["conv2_b"].reshape(1, -1)

    h1 = bn_relu_conv1(x, s1.reshape(1, -1), t1.reshape(1, -1), w1, b1)   # dropout(p=0) == id

    if stride != 1 or in_planes != planes:
        xs = x[:, ::stride, ::stride, :] if stride != 1 else x
        wsc = params["sc_w"].astype(jnp.bfloat16)
        bsc = params["sc_b"].reshape(1, -1)
        out = bn_relu_conv2_projection(h1, xs, s2.reshape(1, -1), t2.reshape(1, -1),
                                       w2, b2, wsc, bsc, stride)
    else:
        out = bn_relu_conv2_identity(h1, x, s2.reshape(1, -1), t2.reshape(1, -1), w2, b2)
    return jnp.transpose(out, (0, 3, 1, 2))                       # NHWC -> NCHW


# ----------------------------------------------------------------------------
# Deterministic synthetic parameters
# ----------------------------------------------------------------------------
def init_wide_basic_params(key, in_planes, planes, with_shortcut):
    ks = jax.random.split(key, 16)
    f32 = jnp.float32
    p = {
        "bn1_gamma": 0.5 + jax.random.uniform(ks[0], (in_planes,), f32),
        "bn1_beta": 0.1 * jax.random.normal(ks[1], (in_planes,), f32),
        "bn1_mean": 0.1 * jax.random.normal(ks[2], (in_planes,), f32),
        "bn1_var": 0.5 + jax.random.uniform(ks[3], (in_planes,), f32),
        "conv1_w": 0.1 * jax.random.normal(ks[4], (3, 3, in_planes, planes), f32),
        "conv1_b": 0.1 * jax.random.normal(ks[5], (planes,), f32),
        "bn2_gamma": 0.5 + jax.random.uniform(ks[6], (planes,), f32),
        "bn2_beta": 0.1 * jax.random.normal(ks[7], (planes,), f32),
        "bn2_mean": 0.1 * jax.random.normal(ks[8], (planes,), f32),
        "bn2_var": 0.5 + jax.random.uniform(ks[9], (planes,), f32),
        "conv2_w": 0.1 * jax.random.normal(ks[10], (3, 3, planes, planes), f32),
        "conv2_b": 0.1 * jax.random.normal(ks[11], (planes,), f32),
    }
    if with_shortcut:
        p["sc_w"] = 0.1 * jax.random.normal(ks[12], (in_planes, planes), f32)
        p["sc_b"] = 0.1 * jax.random.normal(ks[13], (planes,), f32)
    return p


# ----------------------------------------------------------------------------
# Pure-JAX reference (lax.conv). matmul_dtype=bf16 mirrors the kernel's mixed
# precision (bf16 operands, f32 accumulation) for a precision-matched check.
# ----------------------------------------------------------------------------
def reference_forward(params, x_nchw, stride=1, eps=1e-5, matmul_dtype=jnp.float32):
    x = jnp.transpose(x_nchw, (0, 2, 3, 1)).astype(jnp.float32)
    in_planes = x.shape[-1]
    planes = params["conv1_w"].shape[-1]
    dn = ("NHWC", "HWIO", "NHWC")

    def bn_relu(v, g, b, m, var):
        return jnp.maximum((v - m) / jnp.sqrt(var + eps) * g + b, 0.0)

    def conv(v, w, strides, pad):
        return lax.conv_general_dilated(
            v.astype(matmul_dtype), w.astype(matmul_dtype), strides, pad,
            dimension_numbers=dn, preferred_element_type=jnp.float32)

    y1 = bn_relu(x, params["bn1_gamma"], params["bn1_beta"], params["bn1_mean"], params["bn1_var"])
    c1 = conv(y1, params["conv1_w"], (1, 1), ((1, 1), (1, 1))) + params["conv1_b"]
    y2 = bn_relu(c1, params["bn2_gamma"], params["bn2_beta"], params["bn2_mean"], params["bn2_var"])
    c2 = conv(y2, params["conv2_w"], (stride, stride), ((1, 1), (1, 1))) + params["conv2_b"]
    if stride != 1 or in_planes != planes:
        sc = conv(x, params["sc_w"].reshape(1, 1, in_planes, planes),
                  (stride, stride), ((0, 0), (0, 0))) + params["sc_b"]
    else:
        sc = x
    return jnp.transpose(c2 + sc, (0, 3, 1, 2))


if __name__ == "__main__":
    root = jax.random.PRNGKey(0)
    kx1, kp1, kx2, kp2 = jax.random.split(root, 4)

    # Config 1: projection shortcut (in_planes != planes), stride 1 (matches PyTorch example).
    in_planes, planes, stride = 4, 8, 1
    x1 = jax.random.normal(kx1, (2, in_planes, 16, 16), dtype=jnp.float32)
    p1 = init_wide_basic_params(kp1, in_planes, planes, with_shortcut=True)
    out1 = jax.block_until_ready(wide_basic_forward(p1, x1, stride=stride, dropout_rate=0.0))

    ref1_mp = reference_forward(p1, x1, stride=stride, matmul_dtype=jnp.bfloat16)
    ref1_fp = reference_forward(p1, x1, stride=stride, matmul_dtype=jnp.float32)
    assert out1.shape == ref1_fp.shape, (out1.shape, ref1_fp.shape)
    err_mp = float(jnp.max(jnp.abs(out1 - ref1_mp)))
    err_fp = float(jnp.max(jnp.abs(out1 - ref1_fp)))
    assert jnp.allclose(out1, ref1_mp, atol=2e-2, rtol=2e-2), f"precision-matched max err {err_mp}"
    assert jnp.allclose(out1, ref1_fp, atol=1e-1, rtol=1e-1), f"f32-reference max err {err_fp}"

    # Config 2: identity shortcut (in_planes == planes), stride 1.
    x2 = jax.random.normal(kx2, (2, 8, 16, 16), dtype=jnp.float32)
    p2 = init_wide_basic_params(kp2, 8, 8, with_shortcut=False)
    out2 = jax.block_until_ready(wide_basic_forward(p2, x2, stride=1, dropout_rate=0.0))
    ref2_mp = reference_forward(p2, x2, stride=1, matmul_dtype=jnp.bfloat16)
    ref2_fp = reference_forward(p2, x2, stride=1, matmul_dtype=jnp.float32)
    assert jnp.allclose(out2, ref2_mp, atol=2e-2, rtol=2e-2)
    assert jnp.allclose(out2, ref2_fp, atol=1e-1, rtol=1e-1)

    print("KERNEL_OK")
</pallas_src>

<mosaic_0001>
module attributes {stable_mosaic.version = 11 : i64} {
  func.func @_bn_relu_conv1_kernel(%arg0: i32, %arg1: memref<1x16x16x4xf32, #tpu.memory_space<vmem>>, %arg2: memref<1x4xf32, #tpu.memory_space<vmem>>, %arg3: memref<1x4xf32, #tpu.memory_space<vmem>>, %arg4: memref<36x8xbf16, #tpu.memory_space<vmem>>, %arg5: memref<1x8xf32, #tpu.memory_space<vmem>>, %arg6: memref<1x16x16x8xf32, #tpu.memory_space<vmem>>, %arg7: memref<18x18x4xf32, #tpu.memory_space<vmem>>) attributes {dimension_semantics = [#tpu.dimension_semantics<parallel>], iteration_bounds = array<i64: 2>, scalar_prefetch = 0 : i64, scratch_operands = 1 : i64, tpu.core_type = #tpu.core_type<tc>, window_params = [{transform_indices = @transform_0, window_bounds = array<i64: 1, 16, 16, 4>}, {pipeline_mode = #tpu.pipeline_mode<synchronous>, transform_indices = @transform_1, window_bounds = array<i64: 1, 4>}, {pipeline_mode = #tpu.pipeline_mode<synchronous>, transform_indices = @transform_2, window_bounds = array<i64: 1, 4>}, {pipeline_mode = #tpu.pipeline_mode<synchronous>, transform_indices = @transform_3, window_bounds = array<i64: 36, 8>}, {pipeline_mode = #tpu.pipeline_mode<synchronous>, transform_indices = @transform_4, window_bounds = array<i64: 1, 8>}, {transform_indices = @transform_5, window_bounds = array<i64: 1, 16, 16, 8>}]} {
    %c0 = arith.constant 0 : index
    %c0_0 = arith.constant 0 : index
    %c0_1 = arith.constant 0 : index
    %c0_2 = arith.constant 0 : index
    %0 = vector.load %arg1[%c0, %c0_0, %c0_1, %c0_2] : memref<1x16x16x4xf32, #tpu.memory_space<vmem>>, vector<1x16x16x4xf32>
    %1 = vector.shape_cast %0 : vector<1x16x16x4xf32> to vector<16x16x4xf32>
    %c0_3 = arith.constant 0 : index
    %c0_4 = arith.constant 0 : index
    %2 = vector.load %arg2[%c0_3, %c0_4] : memref<1x4xf32, #tpu.memory_space<vmem>>, vector<1x4xf32>
    %3 = vector.shape_cast %2 : vector<1x4xf32> to vector<1x1x4xf32>
    %4 = vector.broadcast %3 : vector<1x1x4xf32> to vector<16x16x4xf32>
    %5 = arith.mulf %1, %4 : vector<16x16x4xf32>
    %c0_5 = arith.constant 0 : index
    %c0_6 = arith.constant 0 : index
    %6 = vector.load %arg3[%c0_5, %c0_6] : memref<1x4xf32, #tpu.memory_space<vmem>>, vector<1x4xf32>
    %7 = vector.shape_cast %6 : vector<1x4xf32> to vector<1x1x4xf32>
    %8 = vector.broadcast %7 : vector<1x1x4xf32> to vector<16x16x4xf32>
    %9 = arith.addf %5, %8 : vector<16x16x4xf32>
    %cst = arith.constant 0.000000e+00 : f32
    %10 = vector.broadcast %cst : f32 to vector<16x16x4xf32>
    %11 = arith.maximumf %9, %10 : vector<16x16x4xf32>
    %cst_7 = arith.constant 0.000000e+00 : f32
    %12 = vector.broadcast %cst_7 : f32 to vector<1x18x4xf32>
    %c0_8 = arith.constant 0 : index
    %c0_9 = arith.constant 0 : index
    %c0_10 = arith.constant 0 : index
    %13 = vector.load %arg7[%c0_8, %c0_9, %c0_10] : memref<18x18x4xf32, #tpu.memory_space<vmem>>, vector<1x18x4xf32>
    tpu.vector_store %arg7[%c0_8, %c0_9, %c0_10], %12 {strides = array<i32>} : memref<18x18x4xf32, #tpu.memory_space<vmem>>, vector<1x18x4xf32>,
    %cst_11 = arith.constant 0.000000e+00 : f32
    %14 = vector.broadcast %cst_11 : f32 to vector<1x18x4xf32>
    %c17 = arith.constant 17 : index
    %c0_12 = arith.constant 0 : index
    %c0_13 = arith.constant 0 : index
    %15 = vector.load %arg7[%c17, %c0_12, %c0_13] : memref<18x18x4xf32, #tpu.memory_space<vmem>>, vector<1x18x4xf32>
    tpu.vector_store %arg7[%c17, %c0_12, %c0_13], %14 {strides = array<i32>} : memref<18x18x4xf32, #tpu.memory_space<vmem>>, vector<1x18x4xf32>,
    %cst_14 = arith.constant 0.000000e+00 : f32
    %16 = vector.broadcast %cst_14 : f32 to vector<18x1x4xf32>
    %c0_15 = arith.constant 0 : index
    %c0_16 = arith.constant 0 : index
    %c0_17 = arith.constant 0 : index
    %17 = vector.load %arg7[%c0_15, %c0_16, %c0_17] : memref<18x18x4xf32, #tpu.memory_space<vmem>>, vector<18x1x4xf32>
    tpu.vector_store %arg7[%c0_15, %c0_16, %c0_17], %16 {strides = array<i32>} : memref<18x18x4xf32, #tpu.memory_space<vmem>>, vector<18x1x4xf32>,
    %cst_18 = arith.constant 0.000000e+00 : f32
    %18 = vector.broadcast %cst_18 : f32 to vector<18x1x4xf32>
    %c0_19 = arith.constant 0 : index
    %c17_20 = arith.constant 17 : index
    %c0_21 = arith.constant 0 : index
    %19 = vector.load %arg7[%c0_19, %c17_20, %c0_21] : memref<18x18x4xf32, #tpu.memory_space<vmem>>, vector<18x1x4xf32>
    tpu.vector_store %arg7[%c0_19, %c17_20, %c0_21], %18 {strides = array<i32>} : memref<18x18x4xf32, #tpu.memory_space<vmem>>, vector<18x1x4xf32>,
    %c1 = arith.constant 1 : index
    %c1_22 = arith.constant 1 : index
    %c0_23 = arith.constant 0 : index
    %20 = vector.load %arg7[%c1, %c1_22, %c0_23] : memref<18x18x4xf32, #tpu.memory_space<vmem>>, vector<16x16x4xf32>
    tpu.vector_store %arg7[%c1, %c1_22, %c0_23], %11 {strides = array<i32>} : memref<18x18x4xf32, #tpu.memory_space<vmem>>, vector<16x16x4xf32>,
    %c0_24 = arith.constant 0 : index
    %c0_25 = arith.constant 0 : index
    %c0_26 = arith.constant 0 : index
    %21 = vector.load %arg7[%c0_24, %c0_25, %c0_26] : memref<18x18x4xf32, #tpu.memory_space<vmem>>, vector<16x16x4xf32>
    %c0_27 = arith.constant 0 : index
    %c1_28 = arith.constant 1 : index
    %c0_29 = arith.constant 0 : index
    %22 = vector.load %arg7[%c0_27, %c1_28, %c0_29] : memref<18x18x4xf32, #tpu.memory_space<vmem>>, vector<16x16x4xf32>
    %c0_30 = arith.constant 0 : index
    %c2 = arith.constant 2 : index
    %c0_31 = arith.constant 0 : index
    %23 = vector.load %arg7[%c0_30, %c2, %c0_31] : memref<18x18x4xf32, #tpu.memory_space<vmem>>, vector<16x16x4xf32>
    %c1_32 = arith.constant 1 : index
    %c0_33 = arith.constant 0 : index
    %c0_34 = arith.constant 0 : index
    %24 = vector.load %arg7[%c1_32, %c0_33, %c0_34] : memref<18x18x4xf32, #tpu.memory_space<vmem>>, vector<16x16x4xf32>
    %c1_35 = arith.constant 1 : index
    %c1_36 = arith.constant 1 : index
    %c0_37 = arith.constant 0 : index
    %25 = vector.load %arg7[%c1_35, %c1_36, %c0_37] : memref<18x18x4xf32, #tpu.memory_space<vmem>>, vector<16x16x4xf32>
    %c1_38 = arith.constant 1 : index
    %c2_39 = arith.constant 2 : index
    %c0_40 = arith.constant 0 : index
    %26 = vector.load %arg7[%c1_38, %c2_39, %c0_40] : memref<18x18x4xf32, #tpu.memory_space<vmem>>, vector<16x16x4xf32>
    %c2_41 = arith.constant 2 : index
    %c0_42 = arith.constant 0 : index
    %c0_43 = arith.constant 0 : index
    %27 = vector.load %arg7[%c2_41, %c0_42, %c0_43] : memref<18x18x4xf32, #tpu.memory_space<vmem>>, vector<16x16x4xf32>
    %c2_44 = arith.constant 2 : index
    %c1_45 = arith.constant 1 : index
    %c0_46 = arith.constant 0 : index
    %28 = vector.load %arg7[%c2_44, %c1_45, %c0_46] : memref<18x18x4xf32, #tpu.memory_space<vmem>>, vector<16x16x4xf32>
    %c2_47 = arith.constant 2 : index
    %c2_48 = arith.constant 2 : index
    %c0_49 = arith.constant 0 : index
    %29 = vector.load %arg7[%c2_47, %c2_48, %c0_49] : memref<18x18x4xf32, #tpu.memory_space<vmem>>, vector<16x16x4xf32>
    %30 = tpu.concatenate %21, %22, %23, %24, %25, %26, %27, %28, %29 in 2 : vector<16x16x4xf32>, vector<16x16x4xf32>, vector<16x16x4xf32>, vector<16x16x4xf32>, vector<16x16x4xf32>, vector<16x16x4xf32>, vector<16x16x4xf32>, vector<16x16x4xf32>, vector<16x16x4xf32> -> vector<16x16x36xf32>
    %31 = vector.shape_cast %30 : vector<16x16x36xf32> to vector<256x36xf32>
    %32 = arith.truncf %31 : vector<256x36xf32> to vector<256x36xbf16>
    %c0_50 = arith.constant 0 : index
    %c0_51 = arith.constant 0 : index
    %33 = vector.load %arg4[%c0_50, %c0_51] : memref<36x8xbf16, #tpu.memory_space<vmem>>, vector<36x8xbf16>
    %cst_52 = arith.constant dense<0.000000e+00> : vector<256x8xf32>
    %34 = tpu.matmul %32, %33, %cst_52 {dimension_numbers = #tpu.dot_dimension_numbers<[1], [0], [0], [1], [0, 0, 1, 1], [], []>} : vector<256x36xbf16>, vector<36x8xbf16>, vector<256x8xf32> -> vector<256x8xf32>
    %c0_53 = arith.constant 0 : index
    %c0_54 = arith.constant 0 : index
    %35 = vector.load %arg5[%c0_53, %c0_54] : memref<1x8xf32, #tpu.memory_space<vmem>>, vector<1x8xf32>
    %36 = vector.broadcast %35 : vector<1x8xf32> to vector<256x8xf32>
    %37 = arith.addf %34, %36 : vector<256x8xf32>
    %38 = vector.shape_cast %37 : vector<256x8xf32> to vector<16x16x8xf32>
    %c0_55 = arith.constant 0 : index
    %c0_56 = arith.constant 0 : index
    %c0_57 = arith.constant 0 : index
    %c0_58 = arith.constant 0 : index
    %39 = vector.load %arg6[%c0_55, %c0_56, %c0_57, %c0_58] : memref<1x16x16x8xf32, #tpu.memory_space<vmem>>, vector<1x16x16x8xf32>
    %40 = vector.shape_cast %39 : vector<1x16x16x8xf32> to vector<16x16x8xf32>
    %41 = vector.shape_cast %38 : vector<16x16x8xf32> to vector<1x16x16x8xf32>
    tpu.vector_store %arg6[%c0_55, %c0_56, %c0_57, %c0_58], %41 {strides = array<i32>} : memref<1x16x16x8xf32, #tpu.memory_space<vmem>>, vector<1x16x16x8xf32>,
    return
  }
  func.func @transform_0(%arg0: i32) -> (i32, i32, i32, i32) {
    %c0_i32 = arith.constant 0 : i32
    %c0_i32_0 = arith.constant 0 : i32
    %c0_i32_1 = arith.constant 0 : i32
    %c0_i32_2 = arith.constant 0 : i32
    return %arg0, %c0_i32, %c0_i32_0, %c0_i32_1 : i32, i32, i32, i32
  }
  func.func @transform_1(%arg0: i32) -> (i32, i32) {
    %c0_i32 = arith.constant 0 : i32
    %c0_i32_0 = arith.constant 0 : i32
    %c0_i32_1 = arith.constant 0 : i32
    return %c0_i32, %c0_i32_0 : i32, i32
  }
  func.func @transform_2(%arg0: i32) -> (i32, i32) {
    %c0_i32 = arith.constant 0 : i32
    %c0_i32_0 = arith.constant 0 : i32
    %c0_i32_1 = arith.constant 0 : i32
    return %c0_i32, %c0_i32_0 : i32, i32
  }
  func.func @transform_3(%arg0: i32) -> (i32, i32) {
    %c0_i32 = arith.constant 0 : i32
    %c0_i32_0 = arith.constant 0 : i32
    %c0_i32_1 = arith.constant 0 : i32
    return %c0_i32, %c0_i32_0 : i32, i32
  }
  func.func @transform_4(%arg0: i32) -> (i32, i32) {
    %c0_i32 = arith.constant 0 : i32
    %c0_i32_0 = arith.constant 0 : i32
    %c0_i32_1 = arith.constant 0 : i32
    return %c0_i32, %c0_i32_0 : i32, i32
  }
  func.func @transform_5(%arg0: i32) -> (i32, i32, i32, i32) {
    %c0_i32 = arith.constant 0 : i32
    %c0_i32_0 = arith.constant 0 : i32
    %c0_i32_1 = arith.constant 0 : i32
    %c0_i32_2 = arith.constant 0 : i32
    return %arg0, %c0_i32, %c0_i32_0, %c0_i32_1 : i32, i32, i32, i32
  }
}

</mosaic_0001>

<bundles_post_ra>
// kernel: tpu_custom_call.1
= control target key start
LH: loop header
LB: loop body
LE: loop exit
PB: predicated region body
PF: predicated region fallthrough
CT: control target
= control target key end

     0   :  { %s3179_s18 = smov 0   ;;  %s4598_s0 = inlined_call_operand.vmem [shape: f32[2,16,16,4], index: 0, kind: input, shape index: {}]   ;;  %s4599_s1 = inlined_call_operand.vmem [shape: f32[1,4], index: 1, kind: input, shape index: {}]   ;;  %s4600_s2 = inlined_call_operand.vmem [shape: f32[1,4], index: 2, kind: input, shape index: {}]   ;;  %s4601_s3 = inlined_call_operand.vmem [shape: bf16[36,8], index: 3, kind: input, shape index: {}]   ;;  %s4602_s4 = inlined_call_operand.vmem [shape: f32[1,8], index: 4, kind: input, shape index: {}]   ;;  %s4603_s5 = inlined_call_operand.vmem [shape: f32[2,16,16,8], index: 5, kind: output, shape index: {}]  }
   0x1 LB: > { %s2367_s19 = sadd.s32 4294967295, %s3138_s18   ;;  %p2371_p0 = scmp.ge.s32.totalorder %s3138_s18, 1  ;;  %s3138_s18 = sphi %s3179_s18, %s15_s18  }
   0x2   : > { %p187_p1 = scmp.lt.s32.totalorder %s3138_s18, 3 }
   0x4   : > { %p188_p2 = pnand %p2371_p0, %p187_p1 }
   0x6   : > { %191 = sbr.rel (%p188_p2) target bundleno = 635 (0x27b), region = 40 }
   0xd   : > { %vm368_vm0 = vcmask 31744   ;;  %vm371_vm1 = vcmask 25600   ;;  %vm377_vm2 = vcmask 24576   ;;  %p3189_p3 = scmp.lt.s32.totalorder %s2367_s19, 1  ;;  %v3140_v0 = vmov 0.0   ;;  %s3141_s29 = smov 4  }
   0xe   : > { %369 = vst.msk [vmem:[#allocation2] sm:$0xff] %vm368_vm0, %v3140_v0  ;;  %370 = vst.msk [vmem:[#allocation2 + $0x8] sm:$0xff] %vm368_vm0, %v3140_v0  ;;  %v3243_v1 = vld [vmem:[%s4599_s1] ss:$0 sm:$0xff]  ;;  %s3142_s30 = smov 8   ;;  %s3143_s6 = smov 12  }
   0xf   : > { %372 = vst.msk [vmem:[#allocation2 + $0x10] sm:$0x3] %vm371_vm1, %v3140_v0  ;;  %376 = vst.msk [vmem:[#allocation2 + $0x1a8] sm:$0x3] %vm371_vm1, %v3140_v0  ;;  %s4705_s19 = smov (!%p3189_p3, %s2367_s19), 1  ;;  %s3144_s7 = smov 16  }
  0x10   : > { %374 = vst.msk [vmem:[#allocation2 + $0x198] sm:$0xff] %vm368_vm0, %v3140_v0  ;;  %375 = vst.msk [vmem:[#allocation2 + $0x1a0] sm:$0xff] %vm368_vm0, %v3140_v0  ;;  %s2400_s21 = sshll.u32 %s4705_s19, 8  ;;  %v3255_v2 = vld [vmem:[%s4600_s2] ss:$0 sm:$0xff]  ;;  %s3145_s8 = smov 20  }
  0x11   : > { %379 = vst.msk [vmem:[#allocation2 + $0x18] sm:$0x1] %vm377_vm2, %v3140_v0  ;;  %380 = vst.msk [vmem:[#allocation2 + $0x30] sm:$0x1] %vm377_vm2, %v3140_v0  ;;  %s3250_s26 = scalar_lea.vmem %s4598_s0, %s2400_s21  ;;  %s3146_s11 = smov 24   ;;  %vm2115_vm3 = vcmask 1041408  }
  0x12   : > { %381 = vst.msk [vmem:[#allocation2 + $0x48] sm:$0x1] %vm377_vm2, %v3140_v0  ;;  %382 = vst.msk [vmem:[#allocation2 + $0x60] sm:$0x1] %vm377_vm2, %v3140_v0  ;;  %v228_v3 = vld [vmem:[%s3250_s26 + $0x10] sm:$0xff]  ;;  %v229_v4 = vld [vmem:[%s3250_s26 + $0x18] sm:$0xff]  ;;  %s4497_s25 = scalar_lea.vmem %s4603_s5, %s2400_s21 }
  0x13   : > { %383 = vst.msk [vmem:[#allocation2 + $0x78] sm:$0x1] %vm377_vm2, %v3140_v0  ;;  %384 = vst.msk [vmem:[#allocation2 + $0x90] sm:$0x1] %vm377_vm2, %v3140_v0  ;;  %v226_v5 = vld [vmem:[%s3250_s26] sm:$0xff]  ;;  %v267_v6 = vmul.f32 %v3243_v1, %v228_v3  ;;  %v268_v7 = vmul.f32 %v3243_v1, %v229_v4  ;;  %v227_v8 = vld [vmem:[%s3250_s26 + $0x8] sm:$0xff] }
  0x14   : > { %385 = vst.msk [vmem:[#allocation2 + $0xa8] sm:$0x1] %vm377_vm2, %v3140_v0  ;;  %386 = vst.msk [vmem:[#allocation2 + $0xc0] sm:$0x1] %vm377_vm2, %v3140_v0  ;;  %v265_v9 = vmul.f32 %v3243_v1, %v226_v5  ;;  %v230_v10 = vld [vmem:[%s3250_s26 + $0x20] sm:$0xff]  ;;  %v231_v11 = vld [vmem:[%s3250_s26 + $0x28] sm:$0xff]  ;;  %v266_v14 = vmul.f32 %v3243_v1, %v227_v8 }
  0x15   : > { %387 = vst.msk [vmem:[#allocation2 + $0xd8] sm:$0x1] %vm377_vm2, %v3140_v0  ;;  %388 = vst.msk [vmem:[#allocation2 + $0xf0] sm:$0x1] %vm377_vm2, %v3140_v0  ;;  %v479_v12 = vld [vmem:[#allocation2 + $0x1] sm:$0xff]  ;;  %v269_v15 = vmul.f32 %v3243_v1, %v230_v10  ;;  %v270_v16 = vmul.f32 %v3243_v1, %v231_v11  ;;  %v232_v17 = vld [vmem:[%s3250_s26 + $0x30] sm:$0xff]  ;;  %v306_v19 = vadd.f32 %v3255_v2, %v267_v6 }
  0x16   : > { %389 = vst.msk [vmem:[#allocation2 + $0x108] sm:$0x1] %vm377_vm2, %v3140_v0  ;;  %390 = vst.msk [vmem:[#allocation2 + $0x120] sm:$0x1] %vm377_vm2, %v3140_v0  ;;  %v480_v13 = vld [vmem:[#allocation2 + $0x9] sm:$0xff]  ;;  %v307_v20 = vadd.f32 %v3255_v2, %v268_v7  ;;  %v304_v21 = vadd.f32 %v3255_v2, %v265_v9  ;;  %v233_v22 = vld [vmem:[%s3250_s26 + $0x38] sm:$0xff]  ;;  %v305_v23 = vadd.f32 %v3255_v2, %v266_v14 }
  0x17   : > { %391 = vst.msk [vmem:[#allocation2 + $0x138] sm:$0x1] %vm377_vm2, %v3140_v0  ;;  %392 = vst.msk [vmem:[#allocation2 + $0x150] sm:$0x1] %vm377_vm2, %v3140_v0  ;;  %v2484_v18 = vpack.i.bf16 %v480_v13, %v479_v12  ;;  %v308_v24 = vadd.f32 %v3255_v2, %v269_v15  ;;  %v309_v25 = vadd.f32 %v3255_v2, %v270_v16  ;;  %v234_v27 = vld [vmem:[%s3250_s26 + $0x40] sm:$0xff]  ;;  %v235_v28 = vld [vmem:[%s3250_s26 + $0x48] sm:$0xff] }
  0x18   : > { %393 = vst.msk [vmem:[#allocation2 + $0x168] sm:$0x1] %vm377_vm2, %v3140_v0  ;;  %394 = vst.msk [vmem:[#allocation2 + $0x180] sm:$0x1] %vm377_vm2, %v3140_v0  ;;  %v271_v26 = vmul.f32 %v3243_v1, %v232_v17  ;;  %v236_v29 = vld [vmem:[%s3250_s26 + $0x50] sm:$0xff]  ;;  %v338_v30 = vmax.f32 %v306_v19, 0.0  ;;  %v272_v33 = vmul.f32 %v3243_v1, %v233_v22  ;;  %v273_v42 = vmul.f32 %v3243_v1, %v234_v27 }
  0x19   : > { %397 = vst.msk [vmem:[#allocation2 + $0x29] sm:$0x1] %vm377_vm2, %v3140_v0  ;;  %398 = vst.msk [vmem:[#allocation2 + $0x41] sm:$0x1] %vm377_vm2, %v3140_v0  ;;  %2485 = vrot.lane.b32.xlu0 %v2484_v18, %s3141_s29  ;;  %v339_v31 = vmax.f32 %v307_v20, 0.0  ;;  %v336_v32 = vmax.f32 %v304_v21, 0.0  ;;  %v274_v43 = vmul.f32 %v3243_v1, %v235_v28  ;;  %v275_v44 = vmul.f32 %v3243_v1, %v236_v29 }
  0x1a   : > { %399 = vst.msk [vmem:[#allocation2 + $0x59] sm:$0x1] %vm377_vm2, %v3140_v0  ;;  %400 = vst.msk [vmem:[#allocation2 + $0x71] sm:$0x1] %vm377_vm2, %v3140_v0  ;;  %v237_v34 = vld [vmem:[%s3250_s26 + $0x58] sm:$0xff]  ;;  %v238_v35 = vld [vmem:[%s3250_s26 + $0x60] sm:$0xff]  ;;  %v310_v40 = vadd.f32 %v3255_v2, %v271_v26  ;;  %v311_v41 = vadd.f32 %v3255_v2, %v272_v33  ;;  %v312_v52 = vadd.f32 %v3255_v2, %v273_v42 }
  0x1b   : > { %401 = vst.msk [vmem:[#allocation2 + $0x89] sm:$0x1] %vm377_vm2, %v3140_v0  ;;  %402 = vst.msk [vmem:[#allocation2 + $0xa1] sm:$0x1] %vm377_vm2, %v3140_v0  ;;  %v239_v36 = vld [vmem:[%s3250_s26 + $0x68] sm:$0xff]  ;;  %v337_v37 = vmax.f32 %v305_v23, 0.0  ;;  %v276_v47 = vmul.f32 %v3243_v1, %v237_v34  ;;  %v277_v48 = vmul.f32 %v3243_v1, %v238_v35  ;;  %v313_v53 = vadd.f32 %v3255_v2, %v274_v43 }
  0x1c   : > { %403 = vst.msk [vmem:[#allocation2 + $0xb9] sm:$0x1] %vm377_vm2, %v3140_v0  ;;  %404 = vst.msk [vmem:[#allocation2 + $0xd1] sm:$0x1] %vm377_vm2, %v3140_v0  ;;  %v340_v38 = vmax.f32 %v308_v24, 0.0  ;;  %v341_v39 = vmax.f32 %v309_v25, 0.0  ;;  %v278_v49 = vmul.f32 %v3243_v1, %v239_v36  ;;  %v314_v54 = vadd.f32 %v3255_v2, %v275_v44 }
  0x1d   : > { %405 = vst.msk [vmem:[#allocation2 + $0xe9] sm:$0x1] %vm377_vm2, %v3140_v0  ;;  %406 = vst.msk [vmem:[#allocation2 + $0x101] sm:$0x1] %vm377_vm2, %v3140_v0  ;;  %v240_v45 = vld [vmem:[%s3250_s26 + $0x70] sm:$0xff]  ;;  %v342_v46 = vmax.f32 %v310_v40, 0.0  ;;  %v315_v55 = vadd.f32 %v3255_v2, %v276_v47  ;;  %v316_v56 = vadd.f32 %v3255_v2, %v277_v48 }
  0x1e   : > { %407 = vst.msk [vmem:[#allocation2 + $0x119] sm:$0x1] %vm377_vm2, %v3140_v0  ;;  %408 = vst.msk [vmem:[#allocation2 + $0x131] sm:$0x1] %vm377_vm2, %v3140_v0  ;;  %v241_v50 = vld [vmem:[%s3250_s26 + $0x78] sm:$0xff]  ;;  %v343_v51 = vmax.f32 %v311_v41, 0.0  ;;  %v317_v57 = vadd.f32 %v3255_v2, %v278_v49  ;;  %v279_v58 = vmul.f32 %v3243_v1, %v240_v45 }
  0x1f   : > { %409 = vst.msk [vmem:[#allocation2 + $0x149] sm:$0x1] %vm377_vm2, %v3140_v0  ;;  %410 = vst.msk [vmem:[#allocation2 + $0x161] sm:$0x1] %vm377_vm2, %v3140_v0  ;;  %v242_v59 = vld [vmem:[%s3250_s26 + $0x80] sm:$0xff]  ;;  %v243_v60 = vld [vmem:[%s3250_s26 + $0x88] sm:$0xff]  ;;  %v280_v3 = vmul.f32 %v3243_v1, %v241_v50 }
  0x20   : > { %411 = vst.msk [vmem:[#allocation2 + $0x179] sm:$0x1] %vm377_vm2, %v3140_v0  ;;  %412 = vst.msk [vmem:[#allocation2 + $0x191] sm:$0x1] %vm377_vm2, %v3140_v0  ;;  %v244_v61 = vld [vmem:[%s3250_s26 + $0x90] sm:$0xff]  ;;  %v344_v62 = vmax.f32 %v312_v52, 0.0  ;;  %v318_v10 = vadd.f32 %v3255_v2, %v279_v58  ;;  %v281_v12 = vmul.f32 %v3243_v1, %v242_v59  ;;  %v282_v13 = vmul.f32 %v3243_v1, %v243_v60 }
  0x21   : > { %396 = vst.msk [vmem:[#allocation2 + $0x11] sm:$0x1] %vm377_vm2, %v3140_v0  ;;  %413 = vst.msk [vmem:[#allocation2 + $0x1a9] sm:$0x1] %vm377_vm2, %v3140_v0  ;;  %v345_v63 = vmax.f32 %v313_v53, 0.0  ;;  %v245_v4 = vld [vmem:[%s3250_s26 + $0x98] sm:$0xff]  ;;  %v319_v11 = vadd.f32 %v3255_v2, %v280_v3  ;;  %v283_v14 = vmul.f32 %v3243_v1, %v244_v61 }
  0x22   : > { %378 = vst.msk [vmem:[#allocation2] sm:$0x1] %vm377_vm2, %v3140_v0  ;;  %395 = vst.msk [vmem:[#allocation2 + $0x198] sm:$0x1] %vm377_vm2, %v3140_v0  ;;  %v346_v0 = vmax.f32 %v314_v54, 0.0  ;;  %v246_v5 = vld [vmem:[%s3250_s26 + $0xa0] sm:$0xff]  ;;  %v284_v21 = vmul.f32 %v3243_v1, %v245_v4  ;;  %v320_v29 = vadd.f32 %v3255_v2, %v281_v12 }
  0x23   : > { %417 = vst.msk [vmem:[#allocation2 + $0x31] sm:$0xff] %vm368_vm0, %v338_v30  ;;  %418 = vst.msk [vmem:[#allocation2 + $0x39] sm:$0xff] %vm368_vm0, %v339_v31  ;;  %v247_v6 = vld [vmem:[%s3250_s26 + $0xa8] sm:$0xff]  ;;  %v347_v7 = vmax.f32 %v315_v55, 0.0  ;;  %v348_v8 = vmax.f32 %v316_v56, 0.0  ;;  %v349_v9 = vmax.f32 %v317_v57, 0.0  ;;  %v285_v22 = vmul.f32 %v3243_v1, %v246_v5 }
  0x24   : > { %415 = vst.msk [vmem:[#allocation2 + $0x19] sm:$0xff] %vm368_vm0, %v336_v32  ;;  %416 = vst.msk [vmem:[#allocation2 + $0x21] sm:$0xff] %vm368_vm0, %v337_v37  ;;  %v248_v15 = vld [vmem:[%s3250_s26 + $0xb0] sm:$0xff]  ;;  %v249_v16 = vld [vmem:[%s3250_s26 + $0xb8] sm:$0xff]  ;;  %v350_v20 = vmax.f32 %v318_v10, 0.0  ;;  %v286_v23 = vmul.f32 %v3243_v1, %v247_v6  ;;  %v351_v28 = vmax.f32 %v319_v11, 0.0  ;;  %v321_v30 = vadd.f32 %v3255_v2, %v282_v13 }
  0x25   : > { %419 = vst.msk [vmem:[#allocation2 + $0x49] sm:$0xff] %vm368_vm0, %v340_v38  ;;  %420 = vst.msk [vmem:[#allocation2 + $0x51] sm:$0xff] %vm368_vm0, %v341_v39  ;;  %v322_v33 = vadd.f32 %v3255_v2, %v283_v14  ;;  %v323_v34 = vadd.f32 %v3255_v2, %v284_v21  ;;  %v250_v35 = vld [vmem:[%s3250_s26 + $0xc0] sm:$0xff]  ;;  %v352_v37 = vmax.f32 %v320_v29, 0.0  ;;  %v324_v39 = vadd.f32 %v3255_v2, %v285_v22  ;;  %v251_v41 = vld [vmem:[%s3250_s26 + $0xc8] sm:$0xff]  ;;  %s3147_s16 = smov 28  }
  0x26   : > { %421 = vst.msk [vmem:[#allocation2 + $0x61] sm:$0xff] %vm368_vm0, %v342_v46  ;;  %422 = vst.msk [vmem:[#allocation2 + $0x69] sm:$0xff] %vm368_vm0, %v343_v51  ;;  %v353_v38 = vmax.f32 %v321_v30, 0.0  ;;  %v325_v40 = vadd.f32 %v3255_v2, %v286_v23  ;;  %v252_v42 = vld [vmem:[%s3250_s26 + $0xd0] sm:$0xff]  ;;  %v287_v46 = vmul.f32 %v3243_v1, %v248_v15  ;;  %v288_v47 = vmul.f32 %v3243_v1, %v249_v16  ;;  %v253_v48 = vld [vmem:[%s3250_s26 + $0xd8] sm:$0xff]  ;;  %s3148_s17 = smov 32  }
  0x27   : > { %423 = vst.msk [vmem:[#allocation2 + $0x79] sm:$0xff] %vm368_vm0, %v344_v62  ;;  %424 = vst.msk [vmem:[#allocation2 + $0x81] sm:$0xff] %vm368_vm0, %v345_v63  ;;  %v354_v44 = vmax.f32 %v322_v33, 0.0  ;;  %v355_v45 = vmax.f32 %v323_v34, 0.0  ;;  %v254_v49 = vld [vmem:[%s3250_s26 + $0xe0] sm:$0xff]  ;;  %v356_v51 = vmax.f32 %v324_v39, 0.0  ;;  %v289_v53 = vmul.f32 %v3243_v1, %v250_v35 }
  0x28   : > { %425 = vst.msk [vmem:[#allocation2 + $0x91] sm:$0xff] %vm368_vm0, %v346_v0  ;;  %426 = vst.msk [vmem:[#allocation2 + $0x99] sm:$0xff] %vm368_vm0, %v347_v7  ;;  %v357_v52 = vmax.f32 %v325_v40, 0.0  ;;  %v326_v57 = vadd.f32 %v3255_v2, %v287_v46  ;;  %v327_v58 = vadd.f32 %v3255_v2, %v288_v47  ;;  %v290_v59 = vmul.f32 %v3243_v1, %v251_v41  ;;  %v255_v3 = vld [vmem:[%s3250_s26 + $0xe8] sm:$0xff]  ;;  %v257_v33 = vld [vmem:[%s3250_s26 + $0xf8] sm:$0xff] }
  0x29   : > { %427 = vst.msk [vmem:[#allocation2 + $0xa9] sm:$0xff] %vm368_vm0, %v348_v8  ;;  %428 = vst.msk [vmem:[#allocation2 + $0xb1] sm:$0xff] %vm368_vm0, %v349_v9  ;;  %v291_v60 = vmul.f32 %v3243_v1, %v252_v42  ;;  %v328_v63 = vadd.f32 %v3255_v2, %v289_v53  ;;  %v292_v0 = vmul.f32 %v3243_v1, %v253_v48  ;;  %vm1792_vm4 = vcmask 64512  }
  0x2a   : > { %v483_v17 = vld [vmem:[#allocation2 + $0x31] sm:$0xff]  ;;  %v484_v18 = vld [vmem:[#allocation2 + $0x39] sm:$0xff]  ;;  %429 = vst.msk [vmem:[#allocation2 + $0xc1] sm:$0xff] %vm368_vm0, %v350_v20  ;;  %430 = vst.msk [vmem:[#allocation2 + $0xc9] sm:$0xff] %vm368_vm0, %v351_v28  ;;  %v293_v4 = vmul.f32 %v3243_v1, %v254_v49  ;;  %v358_v8 = vmax.f32 %v326_v57, 0.0  ;;  %v359_v9 = vmax.f32 %v327_v58, 0.0  ;;  %v329_v11 = vadd.f32 %v3255_v2, %v290_v59 }
  0x2b   : > { %v481_v19 = vld [vmem:[#allocation2 + $0x19] sm:$0xff]  ;;  %v3334_v24 = vpack.i.bf16 %v484_v18, %v483_v17  ;;  %v482_v25 = vld [vmem:[#allocation2 + $0x21] sm:$0xff]  ;;  %431 = vst.msk [vmem:[#allocation2 + $0xd9] sm:$0xff] %vm368_vm0, %v352_v37  ;;  %432 = vst.msk [vmem:[#allocation2 + $0xe1] sm:$0xff] %vm368_vm0, %v353_v38  ;;  %v360_v12 = vmax.f32 %v328_v63, 0.0  ;;  %v330_v13 = vadd.f32 %v3255_v2, %v291_v60  ;;  %v331_v14 = vadd.f32 %v3255_v2, %v292_v0 }
  0x2c   : > { %v485_v26 = vld [vmem:[#allocation2 + $0x49] sm:$0xff]  ;;  %v486_v27 = vld [vmem:[#allocation2 + $0x51] sm:$0xff]  ;;  %v3338_v31 = vpack.i.bf16 %v482_v25, %v481_v19  ;;  %433 = vst.msk [vmem:[#allocation2 + $0xf1] sm:$0xff] %vm368_vm0, %v354_v44  ;;  %434 = vst.msk [vmem:[#allocation2 + $0xf9] sm:$0xff] %vm368_vm0, %v355_v45  ;;  %v294_v16 = vmul.f32 %v3243_v1, %v255_v3  ;;  %v332_v17 = vadd.f32 %v3255_v2, %v293_v4  ;;  %v361_v19 = vmax.f32 %v329_v11, 0.0 }
  0x2d   : > { %v3340_v32 = vpack.i.bf16 %v486_v27, %v485_v26  ;;  %2495 = vrot.lane.b32.xlu1 %v3334_v24, %s3141_s29  ;;  %v3348_v36 = vld [vmem:[#allocation2 + $0x61] sm:$0xff]  ;;  %v3357_v43 = vld [vmem:[#allocation2 + $0x69] sm:$0xff]  ;;  %435 = vst.msk [vmem:[#allocation2 + $0x109] sm:$0xff] %vm368_vm0, %v356_v51  ;;  %436 = vst.msk [vmem:[#allocation2 + $0x111] sm:$0xff] %vm368_vm0, %v357_v52  ;;  %v362_v20 = vmax.f32 %v330_v13, 0.0  ;;  %v363_v21 = vmax.f32 %v331_v14, 0.0  ;;  %v296_v41 = vmul.f32 %v3243_v1, %v257_v33 }
  0x2e   : > { %2490 = vrot.lane.b32.xlu0 %v3338_v31, %s3141_s29  ;;  %v2504_v50 = vpack.i.bf16 %v3357_v43, %v3348_v36  ;;  %v489_v54 = vld [vmem:[#allocation2 + $0x79] sm:$0xff]  ;;  %v490_v55 = vld [vmem:[#allocation2 + $0x81] sm:$0xff]  ;;  %437 = vst.msk [vmem:[#allocation2 + $0x121] sm:$0xff] %vm368_vm0, %v358_v8  ;;  %438 = vst.msk [vmem:[#allocation2 + $0x129] sm:$0xff] %vm368_vm0, %v359_v9  ;;  %v333_v26 = vadd.f32 %v3255_v2, %v294_v16  ;;  %v364_v27 = vmax.f32 %v332_v17, 0.0  ;;  %vm1825_vm5 = vcmask 97280  }
  0x2f   : > { %v491_v56 = vld [vmem:[#allocation2 + $0x91] sm:$0xff]  ;;  %v2509_v61 = vpack.i.bf16 %v490_v55, %v489_v54  ;;  %v492_v62 = vld [vmem:[#allocation2 + $0x99] sm:$0xff]  ;;  %439 = vst.msk [vmem:[#allocation2 + $0x139] sm:$0xff] %vm368_vm0, %v360_v12  ;;  %440 = vst.msk [vmem:[#allocation2 + $0x141] sm:$0xff] %vm368_vm0, %v361_v19  ;;  %v335_v49 = vadd.f32 %v3255_v2, %v296_v41  ;;  %vm1858_vm6 = vcmask 130048   ;;  %vm1891_vm7 = vcmask 162816  }
  0x30   : > { %v2514_v5 = vpack.i.bf16 %v492_v62, %v491_v56  ;;  %v493_v6 = vld [vmem:[#allocation2 + $0xa9] sm:$0xff]  ;;  %v494_v7 = vld [vmem:[#allocation2 + $0xb1] sm:$0xff]  ;;  %441 = vst.msk [vmem:[#allocation2 + $0x151] sm:$0xff] %vm368_vm0, %v362_v20  ;;  %442 = vst.msk [vmem:[#allocation2 + $0x159] sm:$0xff] %vm368_vm0, %v363_v21  ;;  %v365_v34 = vmax.f32 %v333_v26, 0.0  ;;  %vm1924_vm8 = vcmask 195584  }
  0x31   : > { %2500 = vrot.lane.b32.xlu1 %v3340_v32, %s3141_s29  ;;  %v495_v10 = vld [vmem:[#allocation2 + $0xc1] sm:$0xff]  ;;  %v496_v15 = vld [vmem:[#allocation2 + $0xc9] sm:$0xff]  ;;  %v2519_v18 = vpack.i.bf16 %v494_v7, %v493_v6  ;;  %443 = vst.msk [vmem:[#allocation2 + $0x169] sm:$0xff] %vm368_vm0, %v364_v27  ;;  %v367_v55 = vmax.f32 %v335_v49, 0.0  ;;  %v523_v17 = vld [vmem:[#allocation2 + $0x92] sm:$0xff]  ;;  %vm1957_vm9 = vcmask 228352  }
  0x32   : > { %2505 = vrot.lane.b32.xlu0 %v2504_v50, %s3141_s29  ;;  %v2524_v22 = vpack.i.bf16 %v496_v15, %v495_v10  ;;  %v3393_v23 = vld [vmem:[#allocation2 + $0xd9] sm:$0xff]  ;;  %v3395_v25 = vld [vmem:[#allocation2 + $0xe1] sm:$0xff]  ;;  %v256_v28 = vld [vmem:[%s3250_s26 + $0xf0] sm:$0xff]  ;;  %444 = vst.msk [vmem:[#allocation2 + $0x171] sm:$0xff] %vm368_vm0, %v365_v34  ;;  %vm1990_vm10 = vcmask 261120   ;;  %vm2066_vm11 = vcmask 293888  }
  0x33   : > { %v3399_v29 = vld [vmem:[#allocation2 + $0xf1] sm:$0xff]  ;;  %v3401_v30 = vld [vmem:[#allocation2 + $0xf9] sm:$0xff]  ;;  %v2529_v35 = vpack.i.bf16 %v3395_v25, %v3393_v23  ;;  %v295_v40 = vmul.f32 %v3243_v1, %v256_v28  ;;  %446 = vst.msk [vmem:[#allocation2 + $0x189] sm:$0xff] %vm368_vm0, %v367_v55  ;;  %v514_v4 = vld [vmem:[#allocation2 + $0x22] sm:$0xff] }
  0x34   : > { %v3414_v37 = vpack.i.bf16 %v3401_v30, %v3399_v29  ;;  %v3416_v38 = vld [vmem:[#allocation2 + $0x109] sm:$0xff]  ;;  %v3418_v39 = vld [vmem:[#allocation2 + $0x111] sm:$0xff]  ;;  %v513_v3 = vld [vmem:[#allocation2 + $0x1a] sm:$0xff] }
  0x35   : > { %2510 = vrot.lane.b32.xlu1 %v2509_v61, %s3141_s29  ;;  %v503_v42 = vld [vmem:[#allocation2 + $0x121] sm:$0xff]  ;;  %v504_v44 = vld [vmem:[#allocation2 + $0x129] sm:$0xff]  ;;  %v334_v48 = vadd.f32 %v3255_v2, %v295_v40  ;;  %v3436_v1 = vpack.i.bf16 %v3418_v39, %v3416_v38  ;;  %v3454_v7 = vpack.i.bf16 %v514_v4, %v513_v3  ;;  %v518_v10 = vld [vmem:[#allocation2 + $0x52] sm:$0xff] }
  0x36   : > { %2515 = vrot.lane.b32.xlu0 %v2514_v5, %s3141_s29  ;;  %v3440_v51 = vpack.i.bf16 %v504_v44, %v503_v42  ;;  %v505_v52 = vld [vmem:[#allocation2 + $0x139] sm:$0xff]  ;;  %v506_v53 = vld [vmem:[#allocation2 + $0x141] sm:$0xff]  ;;  %v512_v62 = vld [vmem:[#allocation2 + $0xa] sm:$0xff] }
  0x37   : > { %v366_v54 = vmax.f32 %v334_v48, 0.0  ;;  %v507_v56 = vld [vmem:[#allocation2 + $0x151] sm:$0xff]  ;;  %v508_v2 = vld [vmem:[#allocation2 + $0x159] sm:$0xff]  ;;  %v3446_v57 = vpack.i.bf16 %v506_v53, %v505_v52  ;;  %v511_v61 = vld [vmem:[#allocation2 + $0x2] sm:$0xff] }
  0x38   : > { %v2554_v58 = vpack.i.bf16 %v508_v2, %v507_v56  ;;  %v509_v59 = vld [vmem:[#allocation2 + $0x169] sm:$0xff]  ;;  %v2564_v0 = vpack.i.bf16 %v512_v62, %v511_v61  ;;  %v515_v5 = vld [vmem:[#allocation2 + $0x32] sm:$0xff]  ;;  %v516_v6 = vld [vmem:[#allocation2 + $0x3a] sm:$0xff] }
  0x39   : > { %2520 = vrot.lane.b32.xlu1 %v2519_v18, %s3141_s29  ;;  %445 = vst.msk [vmem:[#allocation2 + $0x181] sm:$0xff] %vm368_vm0, %v366_v54  ;;  %v510_v60 = vld [vmem:[#allocation2 + $0x171] sm:$0xff]  ;;  %v3457_v8 = vpack.i.bf16 %v516_v6, %v515_v5  ;;  %v519_v11 = vld [vmem:[#allocation2 + $0x62] sm:$0xff]  ;;  %v521_v15 = vld [vmem:[#allocation2 + $0x7a] sm:$0xff] }
  0x3a   : > { %2525 = vrot.lane.b32.xlu0 %v2524_v22, %s3141_s29  ;;  %v2559_v63 = vpack.i.bf16 %v510_v60, %v509_v59  ;;  %v517_v9 = vld [vmem:[#allocation2 + $0x4a] sm:$0xff]  ;;  %v522_v16 = vld [vmem:[#allocation2 + $0x82] sm:$0xff]  ;;  %v524_v18 = vld [vmem:[#allocation2 + $0x9a] sm:$0xff] }
  0x3b   : > { %v520_v12 = vld [vmem:[#allocation2 + $0x6a] sm:$0xff]  ;;  %v3461_v13 = vpack.i.bf16 %v518_v10, %v517_v9  ;;  %v3469_v19 = vpack.i.bf16 %v522_v16, %v521_v15  ;;  %v2594_v20 = vpack.i.bf16 %v524_v18, %v523_v17  ;;  %v526_v22 = vld [vmem:[#allocation2 + $0xb2] sm:$0xff]  ;;  %v527_v26 = vld [vmem:[#allocation2 + $0xc2] sm:$0xff] }
  0x3c   : > { %v3465_v14 = vpack.i.bf16 %v520_v12, %v519_v11  ;;  %v525_v21 = vld [vmem:[#allocation2 + $0xaa] sm:$0xff]  ;;  %v529_v34 = vld [vmem:[#allocation2 + $0xda] sm:$0xff]  ;;  %v531_v40 = vld [vmem:[#allocation2 + $0xf2] sm:$0xff] }
  0x3d   : > { %2530 = vrot.lane.b32.xlu1 %v2529_v35, %s3141_s29  ;;  %v528_v27 = vld [vmem:[#allocation2 + $0xca] sm:$0xff]  ;;  %v2599_v28 = vpack.i.bf16 %v526_v22, %v525_v21  ;;  %v530_v35 = vld [vmem:[#allocation2 + $0xe2] sm:$0xff]  ;;  %v532_v41 = vld [vmem:[#allocation2 + $0xfa] sm:$0xff] }
  0x3e   : > { %2535 = vrot.lane.b32.xlu0 %v3414_v37, %s3141_s29  ;;  %v2604_v33 = vpack.i.bf16 %v528_v27, %v527_v26  ;;  %v3477_v42 = vpack.i.bf16 %v530_v35, %v529_v34  ;;  %v3480_v44 = vpack.i.bf16 %v532_v41, %v531_v40  ;;  %v533_v48 = vld [vmem:[#allocation2 + $0x10a] sm:$0xff]  ;;  %v534_v49 = vld [vmem:[#allocation2 + $0x112] sm:$0xff]  ;;  %v535_v52 = vld [vmem:[#allocation2 + $0x122] sm:$0xff] }
  0x3f   : > { %v536_v53 = vld [vmem:[#allocation2 + $0x12a] sm:$0xff]  ;;  %v3484_v54 = vpack.i.bf16 %v534_v49, %v533_v48  ;;  %v537_v56 = vld [vmem:[#allocation2 + $0x13a] sm:$0xff]  ;;  %v538_v2 = vld [vmem:[#allocation2 + $0x142] sm:$0xff] }
  0x40   : > { %v3488_v55 = vpack.i.bf16 %v536_v53, %v535_v52  ;;  %v540_v59 = vld [vmem:[#allocation2 + $0x15a] sm:$0xff]  ;;  %v3492_v60 = vpack.i.bf16 %v538_v2, %v537_v56  ;;  %v541_v62 = vld [vmem:[#allocation2 + $0x16a] sm:$0xff] }
  0x41   : > { %2540 = vrot.lane.b32.xlu1 %v3436_v1, %s3141_s29  ;;  %v3500_v3 = vld [vmem:[#allocation2 + $0x20] sm:$0xff]  ;;  %v3508_v6 = vld [vmem:[#allocation2 + $0x30] sm:$0xff]  ;;  %v3510_v9 = vld [vmem:[#allocation2 + $0x38] sm:$0xff] }
  0x42   : > { %2545 = vrot.lane.b32.xlu0 %v3440_v51, %s3141_s29  ;;  %4624 = vst [vmem:[#allocation4_spill] sm:$0xff] %v3500_v3  ;;  %v3512_v10 = vld [vmem:[#allocation2 + $0x48] sm:$0xff]  ;;  %v548_v11 = vld [vmem:[#allocation2 + $0x50] sm:$0xff]  ;;  %v3517_v12 = vpack.i.bf16 %v3510_v9, %v3508_v6  ;;  %v3523_v16 = vld [vmem:[#allocation2 + $0x60] sm:$0xff] }
  0x43   : > { %v3521_v15 = vpack.i.bf16 %v548_v11, %v3512_v10  ;;  %v3525_v17 = vld [vmem:[#allocation2 + $0x68] sm:$0xff]  ;;  %v3527_v18 = vld [vmem:[#allocation2 + $0x78] sm:$0xff]  ;;  %v3543_v26 = vld [vmem:[#allocation2 + $0x90] sm:$0xff] }
  0x44   : > { %v3535_v21 = vpack.i.bf16 %v3525_v17, %v3523_v16  ;;  %v3545_v27 = vld [vmem:[#allocation2 + $0x98] sm:$0xff]  ;;  %v3563_v40 = vld [vmem:[#allocation2 + $0xc0] sm:$0xff]  ;;  %v3565_v41 = vld [vmem:[#allocation2 + $0xc8] sm:$0xff] }
  0x45   : > { %2550 = vrot.lane.b32.xlu1 %v3446_v57, %s3141_s29  ;;  %v3555_v34 = vpack.i.bf16 %v3545_v27, %v3543_v26  ;;  %4625 = vst [vmem:[#allocation5_spill] sm:$0xff] %v3563_v40  ;;  %4626 = vst [vmem:[#allocation6_spill] sm:$0xff] %v3565_v41  ;;  %v3567_v48 = vld [vmem:[#allocation2 + $0xd8] sm:$0xff]  ;;  %v3569_v49 = vld [vmem:[#allocation2 + $0xe0] sm:$0xff]  ;;  %v2679_v52 = vpack.i.bf16 %v3565_v41, %v3563_v40  ;;  %v4629_v40 = vpack.i.bf16 %v3393_v23, %v3348_v36 }
  0x46   : > { %2555 = vrot.lane.b32.xlu0 %v2554_v58, %s3141_s29  ;;  %v539_v58 = vld [vmem:[#allocation2 + $0x152] sm:$0xff]  ;;  %4627 = vst [vmem:[#allocation7_spill] sm:$0xff] %v3567_v48  ;;  %4628 = vst [vmem:[#allocation8_spill] sm:$0xff] %v3569_v49  ;;  %v2684_v53 = vpack.i.bf16 %v3569_v49, %v3567_v48  ;;  %v3587_v50 = vld [vmem:[#allocation2 + $0x140] sm:$0xff] }
  0x47   : > { %v3496_v61 = vpack.i.bf16 %v540_v59, %v539_v58  ;;  %v561_v56 = vld [vmem:[#allocation2 + $0xf0] sm:$0xff]  ;;  %v562_v2 = vld [vmem:[#allocation2 + $0xf8] sm:$0xff]  ;;  %v563_v58 = vld [vmem:[#allocation2 + $0x108] sm:$0xff] }
  0x48   : > { %v564_v59 = vld [vmem:[#allocation2 + $0x110] sm:$0xff]  ;;  %v3585_v11 = vld [vmem:[#allocation2 + $0x138] sm:$0xff]  ;;  %v573_v45 = vld [vmem:[#allocation2 + $0x180] sm:$0xff] }
  0x49   : > { %2560 = vrot.lane.b32.xlu1 %v2559_v63, %s3141_s29  ;;  %v542_v63 = vld [vmem:[#allocation2 + $0x172] sm:$0xff]  ;;  %v574_v48 = vld [vmem:[#allocation2 + $0x188] sm:$0xff]  ;;  %v3124_v23 = vld [vmem:[%s4601_s3] sm:$0xff]  }
  0x4a   : > { %2565 = vrot.lane.b32.xlu0 %v2564_v0, %s3142_s30  ;;  %v3498_v0 = vld [vmem:[#allocation2 + $0x18] sm:$0xff]  ;;  %v2639_v4 = vpack.i.bf16 %v542_v63, %v541_v62  ;;  %v2689_v62 = vpack.i.bf16 %v562_v2, %v561_v56  ;;  %v2694_v63 = vpack.i.bf16 %v564_v59, %v563_v58  ;;  %v3603_v2 = vld [vmem:[#allocation2 + $0x168] sm:$0xff]  ;;  %v3605_v58 = vld [vmem:[#allocation2 + $0x170] sm:$0xff]  ;;  %v2719_v49 = vpack.i.bf16 %v574_v48, %v573_v45 }
  0x4b   : > { %4623 = vst [vmem:[#allocation3_spill] sm:$0xff] %v3498_v0  ;;  %v2644_v5 = vpack.i.bf16 %v3500_v3, %v3498_v0  ;;  %v3601_v56 = vld [vmem:[#allocation2 + $0x158] sm:$0xff]  ;;  %v3617_v46 = vpack.i.bf16 %v3605_v58, %v3603_v2  ;;  %v4630_v45 = vpack.i.bf16 %v3399_v29, %v3395_v25  ;;  %2421 = vmatprep.subr.bf16.mxu0 %v3124_v23 }
  0x4c   : > { %2422 = vmatpush3.bf16.msra.mxu0 %v3124_v23  ;;  %2459 = vmatprep.subr.bf16.mxu1 %v3124_v23 }
  0x4d   : > { %2570 = vrot.lane.b32.xlu1 %v3454_v7, %s3142_s30  ;;  %2462 = vmatpush3.bf16.msra.mxu1 %v3124_v23  ;;  %v677_v23 = vld [vmem:[#allocation2 + $0x69] sm:$0xff] }
  0x4e   : > { %2575 = vrot.lane.b32.xlu0 %v3457_v8, %s3142_s30 }
  0x51   : > { %2580 = vrot.lane.b32.xlu1 %v3461_v13, %s3142_s30 }
  0x52   : > { %2585 = vrot.lane.b32.xlu0 %v3465_v14, %s3142_s30 }
  0x55   : > { %2590 = vrot.lane.b32.xlu1 %v3469_v19, %s3142_s30 }
  0x56   : > { %2595 = vrot.lane.b32.xlu0 %v2594_v20, %s3142_s30  ;;  %v3529_v20 = vld [vmem:[#allocation2 + $0x80] sm:$0xff] }
  0x57   : > { %v3541_v22 = vpack.i.bf16 %v3529_v20, %v3527_v18 }
  0x59   : > { %2600 = vrot.lane.b32.xlu1 %v2599_v28, %s3142_s30  ;;  %v3547_v28 = vld [vmem:[#allocation2 + $0xa8] sm:$0xff] }
  0x5a   : > { %2605 = vrot.lane.b32.xlu0 %v2604_v33, %s3142_s30  ;;  %v3549_v33 = vld [vmem:[#allocation2 + $0xb0] sm:$0xff] }
  0x5b   : > { %v3561_v35 = vpack.i.bf16 %v3549_v33, %v3547_v28 }
  0x5d   : > { %2610 = vrot.lane.b32.xlu1 %v3477_v42, %s3142_s30 }
  0x5e   : > { %2615 = vrot.lane.b32.xlu0 %v3480_v44, %s3142_s30 }
  0x61   : > { %2620 = vrot.lane.b32.xlu1 %v3484_v54, %s3142_s30 }
  0x62   : > { %2625 = vrot.lane.b32.xlu0 %v3488_v55, %s3142_s30 }
  0x65   : > { %2630 = vrot.lane.b32.xlu1 %v3492_v60, %s3142_s30 }
  0x66   : > { %2635 = vrot.lane.b32.xlu0 %v3496_v61, %s3142_s30 }
  0x69   : > { %2640 = vrot.lane.b32.xlu1 %v2639_v4, %s3142_s30  ;;  %v3581_v4 = vld [vmem:[#allocation2 + $0x120] sm:$0xff] }
  0x6a   : > { %2645 = vrot.lane.b32.xlu0 %v2644_v5, %s3143_s6  ;;  %v3583_v5 = vld [vmem:[#allocation2 + $0x128] sm:$0xff] }
  0x6b   : > { %v3592_v47 = vpack.i.bf16 %v3583_v5, %v3581_v4 }
  0x6d   : > { %2650 = vrot.lane.b32.xlu1 %v3517_v12, %s3143_s6 }
  0x6e   : > { %2655 = vrot.lane.b32.xlu0 %v3521_v15, %s3143_s6 }
  0x71   : > { %2660 = vrot.lane.b32.xlu1 %v3535_v21, %s3143_s6 }
  0x72   : > { %2665 = vrot.lane.b32.xlu0 %v3541_v22, %s3143_s6 }
  0x75   : > { %2670 = vrot.lane.b32.xlu1 %v3555_v34, %s3143_s6 }
  0x76   : > { %2675 = vrot.lane.b32.xlu0 %v3561_v35, %s3143_s6 }
  0x79   : > { %2680 = vrot.lane.b32.xlu1 %v2679_v52, %s3143_s6  ;;  %v3597_v52 = vpack.i.bf16 %v3587_v50, %v3585_v11 }
  0x7a   : > { %2685 = vrot.lane.b32.xlu0 %v2684_v53, %s3143_s6  ;;  %v3599_v53 = vld [vmem:[#allocation2 + $0x150] sm:$0xff] }
  0x7b   : > { %v3611_v59 = vpack.i.bf16 %v3601_v56, %v3599_v53 }
  0x7d   : > { %2690 = vrot.lane.b32.xlu1 %v2689_v62, %s3143_s6 }
  0x7e   : > { %2695 = vrot.lane.b32.xlu0 %v2694_v63, %s3143_s6 }
  0x81   : > { %2700 = vrot.lane.b32.xlu1 %v3592_v47, %s3143_s6 }
  0x82   : > { %2705 = vrot.lane.b32.xlu0 %v3597_v52, %s3143_s6 }
  0x85   : > { %2710 = vrot.lane.b32.xlu1 %v3611_v59, %s3143_s6 }
  0x86   : > { %2715 = vrot.lane.b32.xlu0 %v3617_v46, %s3143_s6 }
  0x89   : > { %2720 = vrot.lane.b32.xlu1 %v2719_v49, %s3143_s6 }
  0x8a   : > { %2725 = vrot.lane.b32.xlu0 %v3338_v31, %s3144_s7  ;;  %v4631_v31 = vpack.i.bf16 %v3416_v38, %v3401_v30  ;;  %v3125_v30 = vld [vmem:[%s4601_s3 + $0x8] sm:$0xff]  }
  0x8b   : > { %v3648_v36 = vpop.permute.xlu0 %2485  ;;  %2423 = vmatprep.subr.bf16.mxu0 %v3125_v30  ;;  %2460 = vmatprep.subr.bf16.mxu1 %v3125_v30 }
  0x8c   : > { %2424 = vmatpush3.bf16.msra.mxu0 %v3125_v30  ;;  %2463 = vmatpush3.bf16.msra.mxu1 %v3125_v30 }
  0x8d   : > { %2730 = vrot.lane.b32.xlu1 %v3334_v24, %s3144_s7 }
  0x8e   : > { %2735 = vrot.lane.b32.xlu0 %v3340_v32, %s3144_s7 }
  0x91   : > { %2740 = vrot.lane.b32.xlu1 %v4629_v40, %s3144_s7 }
  0x92   : > { %2745 = vrot.lane.b32.xlu0 %v4630_v45, %s3144_s7 }
  0x95   : > { %2750 = vrot.lane.b32.xlu1 %v4631_v31, %s3144_s7  ;;  %v676_v31 = vld [vmem:[#allocation2 + $0x61] sm:$0xff] }
  0x96   : > { %2755 = vrot.lane.b32.xlu0 %v3454_v7, %s3145_s8 }
  0x99   : > { %2760 = vrot.lane.b32.xlu1 %v3477_v42, %s3145_s8  ;;  %v3126_v42 = vld [vmem:[%s4601_s3 + $0x10] ss:$0 sps:$4 sm:$0x33]  }
  0x9a   : > { %2765 = vrot.lane.b32.xlu0 %v3457_v8, %s3145_s8  ;;  %2465 = vmatprep.subr.msk.bf16.mxu0 %vm2115_vm3, %v3126_v42 }
  0x9b   : > { %2466 = vmatprep.subr.msk.bf16.mxu1 %vm2115_vm3, %v3126_v42 }
  0x9d   : > { %2770 = vrot.lane.b32.xlu1 %v3480_v44, %s3145_s8 }
  0x9e   : > { %2775 = vrot.lane.b32.xlu0 %v3517_v12, %s3146_s11  ;;  %v2117_v12 = vsel %vm2115_vm3, %v3126_v42, 0 }
  0x9f   : > { %v3657_v25 = vpop.permute.xlu1 %2495  ;;  %2426 = vmatpush3.bf16.msra.mxu0 %v2117_v12  ;;  %2464 = vmatpush3.bf16.msra.mxu1 %v2117_v12  ;;  %v678_v12 = vld [vmem:[#allocation2 + $0x79] sm:$0xff] }
  0xa0   : > { %v3659_v29 = vpop.permute.xlu0 %2490 }
  0xa1   : > { %2780 = vrot.lane.b32.xlu1 %v2689_v62, %s3146_s11 }
  0xa2   : > { %2785 = vrot.lane.b32.xlu0 %v3521_v15, %s3146_s11 }
  0xa3   : > { %v3667_v38 = vpop.permute.xlu1 %2500 }
  0xa4   : > { %v3669_v7 = vpop.permute.xlu0 %2505 }
  0xa5   : > { %2790 = vrot.lane.b32.xlu1 %v2694_v63, %s3146_s11 }
  0xa6   : > { %2795 = vrot.lane.b32.xlu0 %v3334_v24, %s3147_s16 }
  0xa7   : > { %v3677_v15 = vpop.permute.xlu1 %2510 }
  0xa8   : > { %v3679_v40 = vpop.permute.xlu0 %2515  ;;  %v2512_v3 = vunpack.i.l.bf16 %v3677_v15 }
  0xa9   : > { %2800 = vrot.lane.b32.xlu1 %v3414_v37, %s3147_s16 }
  0xaa   : > { %2805 = vrot.lane.b32.xlu0 %v3340_v32, %s3147_s16 }
  0xab   : > { %v3685_v48 = vpop.permute.xlu1 %2520 }
  0xac   : > { %v3687_v49 = vpop.permute.xlu0 %2525 }
  0xad   : > { %4632 = vst [vmem:[#allocation9_spill] sm:$0xff] %v3687_v49  ;;  %2810 = vrot.lane.b32.xlu1 %v3436_v1, %s3147_s16  ;;  %v4636_v1 = vpack.i.bf16 %v3357_v43, %v3418_v39 }
  0xae   : > { %2815 = vrot.lane.b32.xlu0 %v3457_v8, %s3148_s17 }
  0xaf   : > { %v3693_v24 = vpop.permute.xlu1 %2530 }
  0xb0   : > { %4633 = vst [vmem:[#allocation10_spill] sm:$0xff] %v3693_v24  ;;  %v3695_v62 = vpop.permute.xlu0 %2535 }
  0xb1   : > { %4634 = vst [vmem:[#allocation11_spill] sm:$0xff] %v3695_v62  ;;  %2820 = vrot.lane.b32.xlu1 %v3480_v44, %s3148_s17 }
  0xb2   : > { %2825 = vrot.lane.b32.xlu0 %v3461_v13, %s3148_s17 }
  0xb3   : > { %v3701_v32 = vpop.permute.xlu1 %2540 }
  0xb4   : > { %4635 = vst [vmem:[#allocation12_spill] sm:$0xff] %v3701_v32  ;;  %v3703_v37 = vpop.permute.xlu0 %2545 }
  0xb5   : > { %2830 = vrot.lane.b32.xlu1 %v3484_v54, %s3148_s17 }
  0xb6   : > { %2835 = vrot.lane.b32.xlu0 %v4636_v1, %s3144_s7  ;;  %v679_v1 = vld [vmem:[#allocation2 + $0x81] sm:$0xff] }
  0xb7   : > { %v3711_v8 = vpop.permute.xlu1 %2550 }
  0xb8   : > { %v3713_v63 = vpop.permute.xlu0 %2555 }
  0xb9   : > { %2840 = vrot.lane.b32.xlu1 %v3440_v51, %s3144_s7 }
  0xba   : > { %2845 = vrot.lane.b32.xlu0 %v3461_v13, %s3145_s8 }
  0xbb   : > { %v3719_v44 = vpop.permute.xlu1 %2560 }
  0xbc   : > { %v3721_v45 = vpop.permute.xlu0 %2565 }
  0xbd   : > { %4637 = vst [vmem:[#allocation13_spill] sm:$0xff] %v3721_v45  ;;  %2850 = vrot.lane.b32.xlu1 %v3484_v54, %s3145_s8  ;;  %v2884_v54 = vpack.i.bf16 %v677_v23, %v676_v31  ;;  %v600_v23 = vld [vmem:[#allocation2 + $0x141] sm:$0xff]  ;;  %v2508_v45 = vunpack.i.h.bf16 %v3669_v7 }
  0xbe   : > { %2855 = vrot.lane.b32.xlu0 %v3465_v14, %s3145_s8 }
  0xbf   : > { %v3727_v43 = vpop.permute.xlu1 %2570 }
  0xc0   : > { %4638 = vst [vmem:[#allocation14_spill] sm:$0xff] %v3727_v43  ;;  %v3729_v39 = vpop.permute.xlu0 %2575 }
  0xc1   : > { %2860 = vrot.lane.b32.xlu1 %v3488_v55, %s3145_s8 }
  0xc2   : > { %2865 = vrot.lane.b32.xlu0 %v3535_v21, %s3146_s11  ;;  %v2894_v21 = vpack.i.bf16 %v679_v1, %v678_v12  ;;  %v585_v12 = vld [vmem:[#allocation2 + $0x91] sm:$0xff]  ;;  %v586_v1 = vld [vmem:[#allocation2 + $0x99] sm:$0xff] }
  0xc3   : > { %v3735_v13 = vpop.permute.xlu1 %2580 }
  0xc4   : > { %v3737_v30 = vpop.permute.xlu0 %2585 }
  0xc5   : > { %2870 = vrot.lane.b32.xlu1 %v3592_v47, %s3146_s11 }
  0xc6   : > { %2875 = vrot.lane.b32.xlu0 %v3541_v22, %s3146_s11 }
  0xc7   : > { %v3743_v42 = vpop.permute.xlu1 %2590 }
  0xc8   : > { %v3745_v32 = vpop.permute.xlu0 %2595 }
  0xc9   : > { %2880 = vrot.lane.b32.xlu1 %v3597_v52, %s3146_s11 }
  0xca   : > { %2885 = vrot.lane.b32.xlu0 %v2884_v54, %s3147_s16 }
  0xcb   : > { %v3750_v62 = vpop.permute.xlu1 %2600 }
  0xcc   : > { %v3752_v41 = vpop.permute.xlu0 %2605 }
  0xcd   : > { %4639 = vst [vmem:[#allocation15_spill] sm:$0xff] %v3752_v41  ;;  %2890 = vrot.lane.b32.xlu1 %v3440_v51, %s3147_s16  ;;  %v599_v51 = vld [vmem:[#allocation2 + $0x139] sm:$0xff] }
  0xce   : > { %2895 = vrot.lane.b32.xlu0 %v2894_v21, %s3147_s16 }
  0xcf   : > { %v3757_v47 = vpop.permute.xlu1 %2610 }
  0xd0   : > { %4640 = vst [vmem:[#allocation16_spill] sm:$0xff] %v3757_v47  ;;  %v3759_v22 = vpop.permute.xlu0 %2615 }
  0xd1   : > { %4641 = vst [vmem:[#allocation17_spill] sm:$0xff] %v3759_v22  ;;  %2900 = vrot.lane.b32.xlu1 %v3446_v57, %s3147_s16  ;;  %v602_v22 = vld [vmem:[#allocation2 + $0x159] sm:$0xff] }
  0xd2   : > { %2905 = vrot.lane.b32.xlu0 %v3465_v14, %s3148_s17  ;;  %v2929_v14 = vpack.i.bf16 %v600_v23, %v599_v51  ;;  %v2507_v51 = vunpack.i.l.bf16 %v3669_v7  ;;  %v617_v23 = vld [vmem:[#allocation2 + $0x92] sm:$0xff]  ;;  %v2587_v7 = vunpack.i.l.bf16 %v3737_v30 }
  0xd3   : > { %v3765_v52 = vpop.permute.xlu1 %2620 }
  0xd4   : > { %4642 = vst [vmem:[#allocation18_spill] sm:$0xff] %v3765_v52  ;;  %v3767_v31 = vpop.permute.xlu0 %2625  ;;  %v3780_v52 = vpack.i.bf16 %v586_v1, %v585_v12  ;;  %v618_v12 = vld [vmem:[#allocation2 + $0x9a] sm:$0xff]  ;;  %v2513_v1 = vunpack.i.h.bf16 %v3677_v15  ;;  %v1769_v15 = vsel %vm368_vm0, %v3525_v17, %v2508_v45  ;;  %v1768_v0 = vsel %vm368_vm0, %v3523_v16, %v2507_v51 }
  0xd5   : > { %2910 = vrot.lane.b32.xlu1 %v3488_v55, %s3148_s17  ;;  %v601_v55 = vld [vmem:[#allocation2 + $0x151] sm:$0xff] }
  0xd6   : > { %2915 = vrot.lane.b32.xlu0 %v3469_v19, %s3148_s17  ;;  %v3787_v43 = vpack.i.bf16 %v602_v22, %v601_v55  ;;  %v2518_v22 = vunpack.i.h.bf16 %v3679_v40  ;;  %v2588_v55 = vunpack.i.h.bf16 %v3737_v30  ;;  %v1771_v24 = vsel %vm368_vm0, %v3529_v20, %v2513_v1 }
  0xd7   : > { %v3773_v54 = vpop.permute.xlu1 %2630  ;;  %v1770_v30 = vsel %vm368_vm0, %v3527_v18, %v2512_v3  ;;  %v1801_v20 = vsel %vm1792_vm4, %v1768_v0, %v2587_v7  ;;  %v2598_v18 = vunpack.i.h.bf16 %v3745_v32 }
  0xd8   : > { %v3775_v57 = vpop.permute.xlu0 %2635  ;;  %v1773_v17 = vsel %vm368_vm0, %v3545_v27, %v2518_v22  ;;  %v1802_v3 = vsel %vm1792_vm4, %v1769_v15, %v2588_v55  ;;  %v2523_v27 = vunpack.i.h.bf16 %v3685_v48  ;;  %v2603_v15 = vunpack.i.h.bf16 %v3750_v62 }
  0xd9   : > { %2920 = vrot.lane.b32.xlu1 %v3492_v60, %s3148_s17 }
  0xda   : > { %2925 = vrot.lane.b32.xlu0 %v2894_v21, %s3144_s7 }
  0xdb   : > { %v3782_v47 = vpop.permute.xlu1 %2640 }
  0xdc   : > { %v3784_v41 = vpop.permute.xlu0 %2645 }
  0xdd   : > { %4643 = vst [vmem:[#allocation19_spill] sm:$0xff] %v3784_v41  ;;  %2930 = vrot.lane.b32.xlu1 %v2929_v14, %s3144_s7  ;;  %v2517_v14 = vunpack.i.l.bf16 %v3679_v40 }
  0xde   : > { %2935 = vrot.lane.b32.xlu0 %v3780_v52, %s3144_s7 }
  0xdf   : > { %v3793_v21 = vpop.permute.xlu1 %2650  ;;  %v1772_v16 = vsel %vm368_vm0, %v3543_v26, %v2517_v14  ;;  %v2522_v26 = vunpack.i.l.bf16 %v3685_v48 }
  0xe0   : > { %4644 = vst [vmem:[#allocation20_spill] sm:$0xff] %v3793_v21  ;;  %v3797_v41 = vpop.permute.xlu0 %2655  ;;  %v3807_v21 = vpack.i.bf16 %v618_v12, %v617_v23  ;;  %v2592_v23 = vunpack.i.l.bf16 %v3743_v42 }
  0xe1   : > { %2940 = vrot.lane.b32.xlu1 %v3787_v43, %s3144_s7 }
  0xe2   : > { %2945 = vrot.lane.b32.xlu0 %v3469_v19, %s3145_s8  ;;  %v2593_v19 = vunpack.i.h.bf16 %v3743_v42  ;;  %v2597_v42 = vunpack.i.l.bf16 %v3745_v32  ;;  %v1803_v14 = vsel %vm1792_vm4, %v1770_v30, %v2592_v23  ;;  %v1775_v23 = vsel %vm368_vm0, %v3549_v33, %v2523_v27  ;;  %v683_v33 = vld [vmem:[#allocation2 + $0xb1] sm:$0xff]  ;;  %v698_v27 = vld [vmem:[#allocation2 + $0x169] sm:$0xff] }
  0xe3   : > { %v3813_v40 = vpop.permute.xlu1 %2660 }
  0xe4   : > { %v2666_v12 = vpop.permute.xlu0 %2665  ;;  %v1804_v22 = vsel %vm1792_vm4, %v1771_v24, %v2593_v19 }
  0xe5   : > { %v2668_v45 = vunpack.i.h.bf16 %v2666_v12  ;;  %v2667_v51 = vunpack.i.l.bf16 %v2666_v12  ;;  %2950 = vrot.lane.b32.xlu1 %v3492_v60, %s3145_s8  ;;  %v2602_v12 = vunpack.i.l.bf16 %v3750_v62 }
  0xe6   : > { %2955 = vrot.lane.b32.xlu0 %v3807_v21, %s3145_s8 }
  0xe7   : > { %v3836_v1 = vsel %vm1825_vm5, %v1801_v20, %v2667_v51  ;;  %v3839_v60 = vsel %vm1825_vm5, %v1802_v3, %v2668_v45  ;;  %v2671_v0 = vpop.permute.xlu1 %2670  ;;  %v1805_v45 = vsel %vm1792_vm4, %v1772_v16, %v2597_v42  ;;  %v1806_v51 = vsel %vm1792_vm4, %v1773_v17, %v2598_v18 }
  0xe8   : > { %4645 = vst [vmem:[#allocation21_spill] sm:$0xff] %v3836_v1  ;;  %4646 = vst [vmem:[#allocation22_spill] sm:$0xff] %v3839_v60  ;;  %v2673_v55 = vunpack.i.h.bf16 %v2671_v0  ;;  %v2672_v32 = vunpack.i.l.bf16 %v2671_v0  ;;  %v2676_v7 = vpop.permute.xlu0 %2675  ;;  %v1774_v17 = vsel %vm368_vm0, %v3547_v28, %v2522_v26  ;;  %v1808_v18 = vsel %vm1792_vm4, %v1775_v23, %v2603_v15  ;;  %v682_v28 = vld [vmem:[#allocation2 + $0xa9] sm:$0xff]  ;;  %v4673_v60 = vld [vmem:[#allocation16_spill] sm:$0xff] }
  0xe9   : > { %v2678_v49 = vunpack.i.h.bf16 %v2676_v7  ;;  %v2677_v48 = vunpack.i.l.bf16 %v2676_v7  ;;  %2960 = vrot.lane.b32.xlu1 %v3496_v61, %s3145_s8  ;;  %v2548_v26 = vunpack.i.h.bf16 %v3703_v37  ;;  %v2547_v0 = vunpack.i.l.bf16 %v3703_v37 }
  0xea   : > { %v3850_v24 = vsel %vm1825_vm5, %v1803_v14, %v2672_v32  ;;  %v3853_v30 = vsel %vm1825_vm5, %v1804_v22, %v2673_v55  ;;  %2965 = vrot.lane.b32.xlu0 %v3555_v34, %s3146_s11  ;;  %v1807_v34 = vsel %vm1792_vm4, %v1774_v17, %v2602_v12  ;;  %v699_v14 = vld [vmem:[#allocation2 + $0x171] sm:$0xff]  ;;  %v3887_v55 = vld [vmem:[#allocation2 + $0x15a] sm:$0xff]  ;;  %v2553_v32 = vunpack.i.h.bf16 %v3711_v8 }
  0xeb   : > { %4647 = vst [vmem:[#allocation23_spill] sm:$0xff] %v3850_v24  ;;  %4648 = vst [vmem:[#allocation24_spill] sm:$0xff] %v3853_v30  ;;  %v3858_v62 = vsel %vm1825_vm5, %v1805_v45, %v2677_v48  ;;  %v3861_v19 = vsel %vm1825_vm5, %v1806_v51, %v2678_v49  ;;  %v2681_v61 = vpop.permute.xlu1 %2680  ;;  %v2552_v7 = vunpack.i.l.bf16 %v3711_v8  ;;  %v715_v12 = vld [vmem:[#allocation2 + $0xb2] sm:$0xff]  ;;  %v2558_v48 = vunpack.i.h.bf16 %v3713_v63 }
  0xec   : > { %4649 = vst [vmem:[#allocation25_spill] sm:$0xff] %v3858_v62  ;;  %4650 = vst [vmem:[#allocation26_spill] sm:$0xff] %v3861_v19  ;;  %v2683_v16 = vunpack.i.h.bf16 %v2681_v61  ;;  %v2682_v20 = vunpack.i.l.bf16 %v2681_v61  ;;  %v3867_v3 = vpop.permute.xlu0 %2685  ;;  %v2557_v45 = vunpack.i.l.bf16 %v3713_v63  ;;  %v3897_v37 = vpack.i.bf16 %v683_v33, %v682_v28  ;;  %v4668_v62 = vld [vmem:[#allocation15_spill] sm:$0xff]  ;;  %v4671_v30 = vld [vmem:[#allocation8_spill] sm:$0xff] }
  0xed   : > { %2970 = vrot.lane.b32.xlu1 %v3611_v59, %s3146_s11  ;;  %v3885_v59 = vld [vmem:[#allocation2 + $0x152] sm:$0xff]  ;;  %v2628_v51 = vunpack.i.h.bf16 %v3767_v31  ;;  %v2627_v61 = vunpack.i.l.bf16 %v3767_v31  ;;  %v3903_v8 = vpack.i.bf16 %v699_v14, %v698_v27  ;;  %v2498_v17 = vunpack.i.h.bf16 %v3657_v25 }
  0xee   : > { %v3874_v49 = vsel %vm1825_vm5, %v1807_v34, %v2682_v20  ;;  %v3877_v42 = vsel %vm1825_vm5, %v1808_v18, %v2683_v16  ;;  %2975 = vrot.lane.b32.xlu0 %v3561_v35, %s3146_s11  ;;  %v714_v35 = vld [vmem:[#allocation2 + $0xaa] sm:$0xff]  ;;  %v3009_v23 = vpack.i.bf16 %v3887_v55, %v3885_v59  ;;  %v1785_v63 = vsel %vm368_vm0, %v3583_v5, %v2548_v26 }
  0xef   : > { %4651 = vst [vmem:[#allocation27_spill] sm:$0xff] %v3874_v49  ;;  %4652 = vst [vmem:[#allocation28_spill] sm:$0xff] %v3877_v42  ;;  %v3883_v22 = vpop.permute.xlu1 %2690  ;;  %v3914_v20 = vpack.i.bf16 %v715_v12, %v714_v35  ;;  %v1786_v31 = vsel %vm368_vm0, %v3585_v11, %v2552_v7  ;;  %v2633_v18 = vunpack.i.h.bf16 %v3773_v54  ;;  %v2632_v34 = vunpack.i.l.bf16 %v3773_v54  ;;  %v4665_v49 = vld [vmem:[#allocation4_spill] sm:$0xff] }
  0xf0   : > { %v3891_v15 = vpop.permute.xlu0 %2695  ;;  %v1789_v5 = vsel %vm368_vm0, %v3601_v56, %v2558_v48  ;;  %v1818_v11 = vsel %vm1792_vm4, %v1785_v63, %v2628_v51  ;;  %v2638_v26 = vunpack.i.h.bf16 %v3775_v57  ;;  %v2637_v54 = vunpack.i.l.bf16 %v3775_v57 }
  0xf1   : > { %2980 = vrot.lane.b32.xlu1 %v3617_v46, %s3146_s11  ;;  %v1784_v46 = vsel %vm368_vm0, %v3581_v4, %v2547_v0  ;;  %v1788_v4 = vsel %vm368_vm0, %v3599_v53, %v2557_v45  ;;  %v2563_v56 = vunpack.i.h.bf16 %v3719_v44  ;;  %v2562_v53 = vunpack.i.l.bf16 %v3719_v44 }
  0xf2   : > { %2985 = vrot.lane.b32.xlu0 %v3780_v52, %s3147_s16  ;;  %v1787_v52 = vsel %vm368_vm0, %v3587_v50, %v2553_v32  ;;  %v1817_v50 = vsel %vm1792_vm4, %v1784_v46, %v2627_v61  ;;  %v1819_v55 = vsel %vm1792_vm4, %v1786_v31, %v2632_v34  ;;  %v2643_v35 = vunpack.i.h.bf16 %v3782_v47  ;;  %v730_v46 = vld [vmem:[#allocation2 + $0x16a] sm:$0xff] }
  0xf3   : > { %v3912_v16 = vpop.permute.xlu1 %2700  ;;  %v1820_v59 = vsel %vm1792_vm4, %v1787_v52, %v2633_v18  ;;  %v2642_v12 = vunpack.i.l.bf16 %v3782_v47  ;;  %v1821_v45 = vsel %vm1792_vm4, %v1788_v4, %v2637_v54  ;;  %v1822_v51 = vsel %vm1792_vm4, %v1789_v5, %v2638_v26  ;;  %v731_v47 = vld [vmem:[#allocation2 + $0x172] sm:$0xff] }
  0xf4   : > { %v2706_v28 = vpop.permute.xlu0 %2705  ;;  %v2497_v52 = vunpack.i.l.bf16 %v3657_v25  ;;  %v1791_v31 = vsel %vm368_vm0, %v3605_v58, %v2563_v56  ;;  %v1790_v5 = vsel %vm368_vm0, %v3603_v2, %v2562_v53  ;;  %v2578_v4 = vunpack.i.h.bf16 %v3729_v39 }
  0xf5   : > { %v2708_v33 = vunpack.i.h.bf16 %v2706_v28  ;;  %v2707_v27 = vunpack.i.l.bf16 %v2706_v28  ;;  %2990 = vrot.lane.b32.xlu1 %v3787_v43, %s3147_s16  ;;  %v1824_v58 = vsel %vm1792_vm4, %v1791_v31, %v2643_v35  ;;  %v3976_v26 = vpack.i.bf16 %v731_v47, %v730_v46  ;;  %v448_v46 = vld [vmem:[#allocation2 + $0x8] sm:$0xff] }
  0xf6   : > { %2995 = vrot.lane.b32.xlu0 %v3897_v37, %s3147_s16  ;;  %v2658_v54 = vunpack.i.h.bf16 %v3797_v41  ;;  %v2657_v2 = vunpack.i.l.bf16 %v3797_v41  ;;  %v590_v41 = vld [vmem:[#allocation2 + $0xc9] sm:$0xff]  ;;  %v2662_v25 = vunpack.i.l.bf16 %v3813_v40  ;;  %v2613_v1 = vunpack.i.h.bf16 %v4673_v60 }
  0xf7   : > { %v3937_v0 = vsel %vm1825_vm5, %v1817_v50, %v2707_v27  ;;  %v3940_v43 = vsel %vm1825_vm5, %v1818_v11, %v2708_v33  ;;  %v2711_v14 = vpop.permute.xlu1 %2710  ;;  %v2577_v50 = vunpack.i.l.bf16 %v3729_v39  ;;  %v1823_v11 = vsel %vm1792_vm4, %v1790_v5, %v2642_v12  ;;  %v622_v5 = vld [vmem:[#allocation2 + $0xca] sm:$0xff] }
  0xf8   : > { %4653 = vst [vmem:[#allocation29_spill] sm:$0xff] %v3937_v0  ;;  %4654 = vst [vmem:[#allocation30_spill] sm:$0xff] %v3940_v43  ;;  %v2713_v32 = vunpack.i.h.bf16 %v2711_v14  ;;  %v2712_v57 = vunpack.i.l.bf16 %v2711_v14  ;;  %v2716_v7 = vpop.permute.xlu0 %2715  ;;  %v1765_v39 = vsel %vm368_vm0, %v3510_v9, %v2498_v17  ;;  %v4672_v0 = vld [vmem:[#allocation7_spill] sm:$0xff] }
  0xf9   : > { %v2718_v48 = vunpack.i.h.bf16 %v2716_v7  ;;  %v2717_v44 = vunpack.i.l.bf16 %v2716_v7  ;;  %3000 = vrot.lane.b32.xlu1 %v3903_v8, %s3147_s16 }
  0xfa   : > { %v3951_v61 = vsel %vm1825_vm5, %v1819_v55, %v2712_v57  ;;  %v3954_v63 = vsel %vm1825_vm5, %v1820_v59, %v2713_v32  ;;  %3005 = vrot.lane.b32.xlu0 %v3807_v21, %s3148_s17  ;;  %v589_v59 = vld [vmem:[#allocation2 + $0xc1] sm:$0xff]  ;;  %v1764_v55 = vsel %vm368_vm0, %v3508_v6, %v2497_v52  ;;  %v1798_v32 = vsel %vm1792_vm4, %v1765_v39, %v2578_v4 }
  0xfb   : > { %4655 = vst [vmem:[#allocation31_spill] sm:$0xff] %v3951_v61  ;;  %4656 = vst [vmem:[#allocation32_spill] sm:$0xff] %v3954_v63  ;;  %v3962_v18 = vsel %vm1825_vm5, %v1821_v45, %v2717_v44  ;;  %v3965_v34 = vsel %vm1825_vm5, %v1822_v51, %v2718_v48  ;;  %v2721_v28 = vpop.permute.xlu1 %2720  ;;  %v2582_v57 = vunpack.i.l.bf16 %v3735_v13  ;;  %v1797_v35 = vsel %vm1792_vm4, %v1764_v55, %v2577_v50  ;;  %v605_v44 = vld [vmem:[#allocation2 + $0x181] sm:$0xff]  ;;  %v606_v45 = vld [vmem:[#allocation2 + $0x189] sm:$0xff] }
  0xfc   : > { %4657 = vst [vmem:[#allocation33_spill] sm:$0xff] %v3962_v18  ;;  %4658 = vst [vmem:[#allocation34_spill] sm:$0xff] %v3965_v34  ;;  %v2723_v21 = vunpack.i.h.bf16 %v2721_v28  ;;  %v2722_v33 = vunpack.i.l.bf16 %v2721_v28  ;;  %v3970_v27 = vpop.permute.xlu0 %2725  ;;  %v1830_v17 = vsel %vm1825_vm5, %v1797_v35, %v2657_v2  ;;  %v1831_v48 = vsel %vm1825_vm5, %v1798_v32, %v2658_v54  ;;  %v621_v51 = vld [vmem:[#allocation2 + $0xc2] sm:$0xff]  ;;  %v4038_v55 = vld [vmem:[#allocation2 + $0xd8] sm:$0xff] }
  0xfd   : > { %3010 = vrot.lane.b32.xlu1 %v3009_v23, %s3148_s17  ;;  %v2502_v23 = vunpack.i.l.bf16 %v3667_v38  ;;  %v4007_v6 = vpack.i.bf16 %v590_v41, %v589_v59  ;;  %v637_v4 = vld [vmem:[#allocation2 + $0x182] sm:$0xff]  ;;  %v2487_v39 = vunpack.i.l.bf16 %v3648_v36  ;;  %v4034_v59 = vpack.i.bf16 %v606_v45, %v605_v44  ;;  %v4051_v35 = vld [vmem:[#allocation2 + $0xd9] sm:$0xff] }
  0xfe   : > { %v3981_v56 = vsel %vm1825_vm5, %v1823_v11, %v2722_v33  ;;  %v3984_v53 = vsel %vm1825_vm5, %v1824_v58, %v2723_v21  ;;  %3015 = vrot.lane.b32.xlu0 %v3914_v20, %s3148_s17  ;;  %v2488_v21 = vunpack.i.h.bf16 %v3648_v36  ;;  %v447_v33 = vld [vmem:[#allocation2] sm:$0xff]  ;;  %v4026_v54 = vld [vmem:[#allocation2 + $0xc8] sm:$0xff]  ;;  %v4047_v36 = vld [vmem:[#allocation2 + $0x198] sm:$0xff]  ;;  %v2607_v63 = vunpack.i.l.bf16 %v4668_v62 }
  0xff   : > { %4659 = vst [vmem:[#allocation35_spill] sm:$0xff] %v3981_v56  ;;  %4660 = vst [vmem:[#allocation36_spill] sm:$0xff] %v3984_v53  ;;  %v3993_v14 = vpop.permute.xlu1 %2730  ;;  %v1766_v47 = vsel %vm368_vm0, %v3512_v10, %v2502_v23  ;;  %v4024_v10 = vld [vmem:[#allocation2 + $0xc0] sm:$0xff]  ;;  %v4036_v41 = vld [vmem:[#allocation2 + $0x188] sm:$0xff] }
 0x100   : > { %v2736_v7 = vpop.permute.xlu0 %2735  ;;  %v1799_v50 = vsel %vm1792_vm4, %v1766_v47, %v2582_v57  ;;  %v4028_v2 = vld [vmem:[#allocation2 + $0x180] sm:$0xff]  ;;  %v1761_v47 = vsel %vm368_vm0, %v448_v46, %v2488_v21  ;;  %v4664_v53 = vld [vmem:[#allocation3_spill] sm:$0xff] }
 0x101   : > { %v2738_v12 = vunpack.i.h.bf16 %v2736_v7  ;;  %v2737_v9 = vunpack.i.l.bf16 %v2736_v7  ;;  %3020 = vrot.lane.b32.xlu1 %v3976_v26, %s3148_s17  ;;  %v1832_v23 = vsel %vm1825_vm5, %v1799_v50, %v2662_v25  ;;  %v4040_v32 = vld [vmem:[#allocation2 + $0xe0] sm:$0xff]  ;;  %v2492_v25 = vunpack.i.l.bf16 %v3659_v29 }
 0x102   : > { %3025 = vrot.lane.b32.xlu0 %v3897_v37, %s3144_s7  ;;  %v638_v37 = vld [vmem:[#allocation2 + $0x18a] sm:$0xff]  ;;  %v4049_v7 = vld [vmem:[#allocation2 + $0x1a0] sm:$0xff] }
 0x103   : > { %v4012_v52 = vsel %vm1858_vm6, %v1830_v17, %v2737_v9  ;;  %v4015_v31 = vsel %vm1858_vm6, %v1831_v48, %v2738_v12  ;;  %v4017_v28 = vpop.permute.xlu1 %2740  ;;  %v4057_v9 = vpack.i.bf16 %v622_v5, %v621_v51  ;;  %v4059_v17 = vpack.i.bf16 %v638_v37, %v637_v4  ;;  %v4061_v48 = vld [vmem:[#allocation2 + $0xe1] sm:$0xff]  ;;  %v4063_v44 = vld [vmem:[#allocation2 + $0x199] sm:$0xff] }
 0x104   : > { %v2742_v58 = vunpack.i.l.bf16 %v4017_v28  ;;  %v4022_v11 = vpop.permute.xlu0 %2745  ;;  %v4065_v45 = vld [vmem:[#allocation2 + $0x1a1] sm:$0xff]  ;;  %v1760_v5 = vsel %vm368_vm0, %v447_v33, %v2487_v39  ;;  %v1762_v56 = vsel %vm368_vm0, %v4664_v53, %v2492_v25 }
 0x105   : > { %3030 = vrot.lane.b32.xlu1 %v3903_v8, %s3144_s7  ;;  %v2493_v8 = vunpack.i.h.bf16 %v3659_v29  ;;  %v4662_v4 = vld [vmem:[#allocation9_spill] sm:$0xff]  ;;  %v4667_v33 = vld [vmem:[#allocation14_spill] sm:$0xff] }
 0x106   : > { %v4043_v57 = vsel %vm1858_vm6, %v1832_v23, %v2742_v58  ;;  %3035 = vrot.lane.b32.xlu0 %v4007_v6, %s3144_s7  ;;  %v3064_v58 = vpack.i.bf16 %v4026_v54, %v4024_v10  ;;  %v2528_v37 = vunpack.i.h.bf16 %v4662_v4  ;;  %v2527_v23 = vunpack.i.l.bf16 %v4662_v4  ;;  %v4083_v21 = vld [vmem:[#allocation2 + $0xda] sm:$0xff]  ;;  %v4085_v10 = vld [vmem:[#allocation2 + $0xe2] sm:$0xff] }
 0x107   : > { %4661 = vst [vmem:[#allocation37_spill] sm:$0xff] %v4043_v57  ;;  %v4055_v12 = vpop.permute.xlu1 %2750  ;;  %v4663_v54 = vld [vmem:[#allocation10_spill] sm:$0xff]  ;;  %v4095_v4 = vld [vmem:[#allocation2 + $0x19a] sm:$0xff]  ;;  %v1763_v42 = vsel %vm368_vm0, %v4665_v49, %v2493_v8  ;;  %v2573_v19 = vunpack.i.h.bf16 %v4667_v33  ;;  %v2572_v39 = vunpack.i.l.bf16 %v4667_v33 }
 0x108   : > { %v4068_v50 = vpop.permute.xlu0 %2755  ;;  %v2533_v29 = vunpack.i.h.bf16 %v4663_v54  ;;  %v2532_v51 = vunpack.i.l.bf16 %v4663_v54  ;;  %v4097_v46 = vld [vmem:[#allocation2 + $0x1a2] sm:$0xff] }
 0x109   : > { %3040 = vrot.lane.b32.xlu1 %v4034_v59, %s3144_s7  ;;  %v4666_v54 = vld [vmem:[#allocation13_spill] sm:$0xff]  ;;  %v4669_v25 = vld [vmem:[#allocation6_spill] sm:$0xff] }
 0x10a   : > { %3045 = vrot.lane.b32.xlu0 %v3914_v20, %s3145_s8  ;;  %v2568_v34 = vunpack.i.h.bf16 %v4666_v54  ;;  %v2567_v20 = vunpack.i.l.bf16 %v4666_v54  ;;  %v1777_v49 = vsel %vm368_vm0, %v4669_v25, %v2528_v37  ;;  %v4670_v8 = vld [vmem:[#allocation5_spill] sm:$0xff]  ;;  %v2608_v54 = vunpack.i.h.bf16 %v4668_v62 }
 0x10b   : > { %v4105_v18 = vpop.permute.xlu1 %2760  ;;  %v1776_v24 = vsel %vm368_vm0, %v4670_v8, %v2527_v23  ;;  %v1779_v43 = vsel %vm368_vm0, %v4671_v30, %v2533_v29  ;;  %v1778_v53 = vsel %vm368_vm0, %v4672_v0, %v2532_v51  ;;  %v2612_v37 = vunpack.i.l.bf16 %v4673_v60  ;;  %v4674_v23 = vld [vmem:[#allocation19_spill] sm:$0xff]  ;;  %v4675_v60 = vld [vmem:[#allocation20_spill] sm:$0xff] }
 0x10c   : > { %v4110_v61 = vpop.permute.xlu0 %2765  ;;  %v1794_v62 = vsel %vm1792_vm4, %v1761_v47, %v2568_v34  ;;  %v2648_v25 = vunpack.i.h.bf16 %v4674_v23  ;;  %v2647_v8 = vunpack.i.l.bf16 %v4674_v23  ;;  %v1795_v30 = vsel %vm1792_vm4, %v1762_v56, %v2572_v39 }
 0x10d   : > { %3050 = vrot.lane.b32.xlu1 %v3976_v26, %s3145_s8  ;;  %v1793_v26 = vsel %vm1792_vm4, %v1760_v5, %v2567_v20  ;;  %v1796_v0 = vsel %vm1792_vm4, %v1763_v42, %v2573_v19  ;;  %v1809_v29 = vsel %vm1792_vm4, %v1776_v24, %v2607_v63  ;;  %v2652_v51 = vunpack.i.l.bf16 %v4675_v60 }
 0x10e   : > { %3055 = vrot.lane.b32.xlu0 %v4057_v9, %s3145_s8  ;;  %v1810_v34 = vsel %vm1792_vm4, %v1777_v49, %v2608_v54  ;;  %v2653_v47 = vunpack.i.h.bf16 %v4675_v60  ;;  %v2688_v5 = vunpack.i.h.bf16 %v3867_v3  ;;  %v2687_v20 = vunpack.i.l.bf16 %v3867_v3 }
 0x10f   : > { %v4135_v33 = vpop.permute.xlu1 %2770  ;;  %v1812_v19 = vsel %vm1792_vm4, %v1779_v43, %v2613_v1  ;;  %v1811_v24 = vsel %vm1792_vm4, %v1778_v53, %v2612_v37  ;;  %v2693_v42 = vunpack.i.h.bf16 %v3883_v22  ;;  %v2692_v63 = vunpack.i.l.bf16 %v3883_v22 }
 0x110   : > { %v4141_v57 = vpop.permute.xlu0 %2775  ;;  %v1826_v56 = vsel %vm1825_vm5, %v1793_v26, %v2647_v8  ;;  %v1827_v39 = vsel %vm1825_vm5, %v1794_v62, %v2648_v25  ;;  %v2728_v49 = vunpack.i.h.bf16 %v3970_v27  ;;  %v2727_v3 = vunpack.i.l.bf16 %v3970_v27 }
 0x111   : > { %3060 = vrot.lane.b32.xlu1 %v4059_v17, %s3145_s8  ;;  %v1828_v1 = vsel %vm1825_vm5, %v1795_v30, %v2652_v51  ;;  %v2733_v43 = vunpack.i.h.bf16 %v3993_v14  ;;  %v2732_v53 = vunpack.i.l.bf16 %v3993_v14  ;;  %v2743_v22 = vunpack.i.h.bf16 %v4017_v28 }
 0x112   : > { %3065 = vrot.lane.b32.xlu0 %v3064_v58, %s3146_s11  ;;  %v1829_v37 = vsel %vm1825_vm5, %v1796_v0, %v2653_v47  ;;  %v1842_v62 = vsel %vm1825_vm5, %v1809_v29, %v2687_v20  ;;  %v1843_v26 = vsel %vm1825_vm5, %v1810_v34, %v2688_v5  ;;  %v2748_v27 = vunpack.i.h.bf16 %v4022_v11 }
 0x113   : > { %v4158_v54 = vpop.permute.xlu1 %2780  ;;  %v4676_v23 = vpack.i.bf16 %v4036_v41, %v4028_v2  ;;  %v1844_v14 = vsel %vm1825_vm5, %v1811_v24, %v2692_v63  ;;  %v1845_v28 = vsel %vm1825_vm5, %v1812_v19, %v2693_v42  ;;  %v2747_v25 = vunpack.i.l.bf16 %v4022_v11 }
 0x114   : > { %v4164_v58 = vpop.permute.xlu0 %2785  ;;  %v2752_v8 = vunpack.i.l.bf16 %v4055_v12  ;;  %v4677_v30 = vpack.i.bf16 %v4040_v32, %v4038_v55  ;;  %v1859_v0 = vsel %vm1858_vm6, %v1826_v56, %v2727_v3  ;;  %v1860_v29 = vsel %vm1858_vm6, %v1827_v39, %v2728_v49 }
 0x115   : > { %3070 = vrot.lane.b32.xlu1 %v4676_v23, %s3146_s11  ;;  %v2758_v2 = vunpack.i.h.bf16 %v4068_v50  ;;  %v2757_v41 = vunpack.i.l.bf16 %v4068_v50  ;;  %v1861_v11 = vsel %vm1858_vm6, %v1828_v1, %v2732_v53  ;;  %v1862_v51 = vsel %vm1858_vm6, %v1829_v37, %v2733_v43 }
 0x116   : > { %3075 = vrot.lane.b32.xlu0 %v4677_v30, %s3146_s11  ;;  %v1875_v34 = vsel %vm1858_vm6, %v1842_v62, %v2743_v22  ;;  %v2762_v55 = vunpack.i.l.bf16 %v4105_v18  ;;  %v1877_v47 = vsel %vm1858_vm6, %v1844_v14, %v2748_v27  ;;  %v2763_v5 = vunpack.i.h.bf16 %v4105_v18 }
 0x117   : > { %v4186_v60 = vpop.permute.xlu1 %2790  ;;  %v2768_v20 = vunpack.i.h.bf16 %v4110_v61  ;;  %v2767_v50 = vunpack.i.l.bf16 %v4110_v61  ;;  %v4678_v19 = vpack.i.bf16 %v4049_v7, %v4047_v36  ;;  %v1876_v24 = vsel %vm1858_vm6, %v1843_v26, %v2747_v25 }
 0x118   : > { %v2796_v32 = vpop.permute.xlu0 %2795  ;;  %v1878_v42 = vsel %vm1858_vm6, %v1845_v28, %v2752_v8  ;;  %v2773_v63 = vunpack.i.h.bf16 %v4135_v33  ;;  %v2772_v56 = vunpack.i.l.bf16 %v4135_v33  ;;  %v1892_v18 = vsel %vm1891_vm7, %v1859_v0, %v2757_v41 }
 0x119   : > { %3080 = vrot.lane.b32.xlu1 %v4678_v19, %s3146_s11  ;;  %v1893_v61 = vsel %vm1891_vm7, %v1860_v29, %v2758_v2  ;;  %v2778_v39 = vunpack.i.h.bf16 %v4141_v57  ;;  %v2777_v36 = vunpack.i.l.bf16 %v4141_v57  ;;  %v1908_v49 = vsel %vm1891_vm7, %v1875_v34, %v2762_v55 }
 0x11a   : > { %3085 = vrot.lane.b32.xlu0 %v4007_v6, %s3147_s16  ;;  %v2783_v3 = vunpack.i.h.bf16 %v4158_v54  ;;  %v2782_v1 = vunpack.i.l.bf16 %v4158_v54  ;;  %v2787_v33 = vunpack.i.l.bf16 %v4164_v58  ;;  %v1909_v6 = vsel %vm1891_vm7, %v1876_v24, %v2763_v5 }
 0x11b   : > { %v2801_v7 = vpop.permute.xlu1 %2800  ;;  %v1894_v53 = vsel %vm1891_vm7, %v1861_v11, %v2767_v50  ;;  %v1895_v22 = vsel %vm1891_vm7, %v1862_v51, %v2768_v20  ;;  %v2788_v37 = vunpack.i.h.bf16 %v4164_v58  ;;  %v1910_v57 = vsel %vm1891_vm7, %v1877_v47, %v2772_v56 }
 0x11c   : > { %v2806_v43 = vpop.permute.xlu0 %2805  ;;  %v1911_v62 = vsel %vm1891_vm7, %v1878_v42, %v2773_v63  ;;  %v2798_v26 = vunpack.i.h.bf16 %v2796_v32  ;;  %v2797_v54 = vunpack.i.l.bf16 %v2796_v32  ;;  %v4679_v27 = vpack.i.bf16 %v4061_v48, %v4051_v35 }
 0x11d   : > { %3090 = vrot.lane.b32.xlu1 %v4034_v59, %s3147_s16  ;;  %v1925_v23 = vsel %vm1924_vm8, %v1892_v18, %v2777_v36  ;;  %v1926_v14 = vsel %vm1924_vm8, %v1893_v61, %v2778_v39  ;;  %v2803_v28 = vunpack.i.h.bf16 %v2801_v7  ;;  %v2802_v58 = vunpack.i.l.bf16 %v2801_v7 }
 0x11e   : > { %3095 = vrot.lane.b32.xlu0 %v4679_v27, %s3147_s16  ;;  %v1941_v59 = vsel %vm1924_vm8, %v1908_v49, %v2782_v1  ;;  %v1942_v8 = vsel %vm1924_vm8, %v1909_v6, %v2783_v3  ;;  %v1927_v30 = vsel %vm1924_vm8, %v1894_v53, %v2787_v33  ;;  %v2807_v0 = vunpack.i.l.bf16 %v2806_v43 }
 0x11f   : > { %v2811_v25 = vpop.permute.xlu1 %2810  ;;  %v1928_v2 = vsel %vm1924_vm8, %v1895_v22, %v2788_v37  ;;  %v2793_v35 = vunpack.i.h.bf16 %v4186_v60  ;;  %v4680_v11 = vpack.i.bf16 %v4065_v45, %v4063_v44  ;;  %v2792_v51 = vunpack.i.l.bf16 %v4186_v60 }
 0x120   : > { %v2816_v29 = vpop.permute.xlu0 %2815  ;;  %v2808_v34 = vunpack.i.h.bf16 %v2806_v43  ;;  %v1958_v55 = vsel %vm1957_vm9, %v1925_v23, %v2797_v54  ;;  %v1959_v32 = vsel %vm1957_vm9, %v1926_v14, %v2798_v26  ;;  %v1974_v50 = vsel %vm1957_vm9, %v1941_v59, %v2802_v58  ;;  %v4684_v59 = vld [vmem:[#allocation12_spill] sm:$0xff] }
 0x121   : > { %v2818_v48 = vunpack.i.h.bf16 %v2816_v29  ;;  %v2817_v41 = vunpack.i.l.bf16 %v2816_v29  ;;  %3100 = vrot.lane.b32.xlu1 %v4680_v11, %s3147_s16  ;;  %v1975_v44 = vsel %vm1957_vm9, %v1942_v8, %v2803_v28  ;;  %v1960_v45 = vsel %vm1957_vm9, %v1927_v30, %v2807_v0  ;;  %v3127_v29 = vld [vmem:[#allocation2 + $0x50] sm:$0xff]  ;;  %v4685_v11 = vld [vmem:[#allocation17_spill] sm:$0xff] }
 0x122   : > { %3105 = vrot.lane.b32.xlu0 %v4057_v9, %s3148_s17  ;;  %v2813_v9 = vunpack.i.h.bf16 %v2811_v25  ;;  %v2812_v63 = vunpack.i.l.bf16 %v2811_v25  ;;  %v1961_v61 = vsel %vm1957_vm9, %v1928_v2, %v2808_v34  ;;  %v4681_v39 = vpack.i.bf16 %v4085_v10, %v4083_v21 }
 0x123   : > { %v2821_v47 = vpop.permute.xlu1 %2820  ;;  %v1991_v5 = vsel %vm1990_vm10, %v1958_v55, %v2817_v41  ;;  %v1992_v20 = vsel %vm1990_vm10, %v1959_v32, %v2818_v48  ;;  %v1943_v49 = vsel %vm1924_vm8, %v1910_v57, %v2792_v51  ;;  %v1944_v43 = vsel %vm1924_vm8, %v1911_v62, %v2793_v35  ;;  %v4686_v55 = vld [vmem:[#allocation18_spill] sm:$0xff] }
 0x124   : > { %v2823_v60 = vunpack.i.h.bf16 %v2821_v47  ;;  %v2822_v19 = vunpack.i.l.bf16 %v2821_v47  ;;  %v2826_v24 = vpop.permute.xlu0 %2825  ;;  %v2023_v42 = vpack.c.bf16 %v1992_v20, %v1991_v5  ;;  %v1976_v22 = vsel %vm1957_vm9, %v1943_v49, %v2812_v63  ;;  %v3129_v47 = vld [vmem:[#allocation2 + $0xf0] sm:$0xff] }
 0x125   : > { %v2828_v56 = vunpack.i.h.bf16 %v2826_v24  ;;  %v2827_v18 = vunpack.i.l.bf16 %v2826_v24  ;;  %3110 = vrot.lane.b32.xlu1 %v4059_v17, %s3148_s17  ;;  %v1977_v37 = vsel %vm1957_vm9, %v1944_v43, %v2813_v9  ;;  %v4682_v57 = vpack.i.bf16 %v4097_v46, %v4095_v4  ;;  %v4683_v4 = vld [vmem:[#allocation11_spill] sm:$0xff] }
 0x126   : > { %3115 = vrot.lane.b32.xlu0 %v4681_v39, %s3148_s17  ;;  %2427 = vmatprep.mubr.msk.bf16.mxu0 %vm2066_vm11, %v2023_v42  ;;  %v2007_v36 = vsel %vm1990_vm10, %v1974_v50, %v2822_v19  ;;  %v2008_v7 = vsel %vm1990_vm10, %v1975_v44, %v2823_v60  ;;  %v2503_v28 = vunpack.i.h.bf16 %v3667_v38  ;;  %v2538_v58 = vunpack.i.h.bf16 %v4683_v4  ;;  %v3128_v38 = vld [vmem:[#allocation2 + $0xf8] sm:$0xff]  ;;  %v3130_v20 = vld [vmem:[#allocation2 + $0x110] sm:$0xff] }
 0x127   : > { %v1993_v3 = vsel %vm1990_vm10, %v1960_v45, %v2827_v18  ;;  %v1994_v1 = vsel %vm1990_vm10, %v1961_v61, %v2828_v56  ;;  %v2831_v17 = vpop.permute.xlu1 %2830  ;;  %v2031_v33 = vpack.c.bf16 %v2008_v7, %v2007_v36  ;;  %v2537_v25 = vunpack.i.l.bf16 %v4683_v4  ;;  %v3131_v45 = vld [vmem:[#allocation2 + $0x108] sm:$0xff] }
 0x128   : > { %v2024_v6 = vpack.c.bf16 %v1994_v1, %v1993_v3  ;;  %v2833_v53 = vunpack.i.h.bf16 %v2831_v17  ;;  %v2832_v21 = vunpack.i.l.bf16 %v2831_v17  ;;  %v4261_v10 = vpop.permute.xlu0 %2835  ;;  %v2543_v8 = vunpack.i.h.bf16 %v4684_v59 }
 0x129   : > { %3120 = vrot.lane.b32.xlu1 %v4682_v57, %s3148_s17  ;;  %2443 = vmatprep.mubr.msk.bf16.mxu1 %vm2066_vm11, %v2031_v33  ;;  %v2542_v30 = vunpack.i.l.bf16 %v4684_v59  ;;  %v1767_v2 = vsel %vm368_vm0, %v3127_v29, %v2503_v28  ;;  %v2583_v35 = vunpack.i.h.bf16 %v3735_v13  ;;  %v1781_v41 = vsel %vm368_vm0, %v3128_v38, %v2538_v58 }
 0x12a   : > { %v2009_v26 = vsel %vm1990_vm10, %v1976_v22, %v2832_v21  ;;  %v2010_v62 = vsel %vm1990_vm10, %v1977_v37, %v2833_v53  ;;  %2428 = vmatmul.mubr.msk.bf16.vlgmr.msra.gmra.mrb[0].mxu0 %vm2066_vm11, %v2024_v6  ;;  %v2618_v51 = vunpack.i.h.bf16 %v4685_v11  ;;  %v2617_v34 = vunpack.i.l.bf16 %v4685_v11  ;;  %v4687_v11 = vld [vmem:[#allocation37_spill] sm:$0xff] }
 0x12b   : > { %v2032_v54 = vpack.c.bf16 %v2010_v62, %v2009_v26  ;;  %v2841_v27 = vpop.permute.xlu1 %2840  ;;  %v2623_v32 = vunpack.i.h.bf16 %v4686_v55  ;;  %v1780_v5 = vsel %vm368_vm0, %v3129_v47, %v2537_v25  ;;  %v1783_v50 = vsel %vm368_vm0, %v3130_v20, %v2543_v8 }
 0x12c   : > { %v4273_v23 = vpop.permute.xlu0 %2845  ;;  %v2622_v44 = vunpack.i.l.bf16 %v4686_v55  ;;  %v2663_v13 = vunpack.i.h.bf16 %v3813_v40  ;;  %v1782_v60 = vsel %vm368_vm0, %v3131_v45, %v2542_v30  ;;  %v2698_v19 = vunpack.i.h.bf16 %v3891_v15 }
 0x12d   : > { %2444 = vmatmul.mubr.msk.bf16.vlgmr.msra.gmra.mrb[0].mxu1 %vm2066_vm11, %v2032_v54  ;;  %v2697_v24 = vunpack.i.l.bf16 %v3891_v15  ;;  %v2702_v42 = vunpack.i.l.bf16 %v3912_v16  ;;  %v1800_v63 = vsel %vm1792_vm4, %v1767_v2, %v2583_v35  ;;  %v2703_v56 = vunpack.i.h.bf16 %v3912_v16 }
 0x12e   : > { %v2753_v18 = vunpack.i.h.bf16 %v4055_v12  ;;  %v2838_v61 = vunpack.i.h.bf16 %v4261_v10  ;;  %v1813_v40 = vsel %vm1792_vm4, %v1780_v5, %v2617_v34  ;;  %v1814_v36 = vsel %vm1792_vm4, %v1781_v41, %v2618_v51 }
 0x12f   : > { %v4276_v14 = vpop.permute.xlu1 %2850  ;;  %v1816_v7 = vsel %vm1792_vm4, %v1783_v50, %v2623_v32  ;;  %v2837_v15 = vunpack.i.l.bf16 %v4261_v10  ;;  %v1815_v49 = vsel %vm1792_vm4, %v1782_v60, %v2622_v44  ;;  %v1833_v3 = vsel %vm1825_vm5, %v1800_v63, %v2663_v13 }
 0x130   : > { %v4279_v46 = vpop.permute.xlu0 %2855  ;;  %v2843_v1 = vunpack.i.h.bf16 %v2841_v27  ;;  %v2842_v17 = vunpack.i.l.bf16 %v2841_v27  ;;  %v1846_v16 = vsel %vm1825_vm5, %v1813_v40, %v2697_v24  ;;  %v1847_v12 = vsel %vm1825_vm5, %v1814_v36, %v2698_v19 }
 0x131   : > { %v1848_v33 = vsel %vm1825_vm5, %v1815_v49, %v2702_v42  ;;  %v2847_v43 = vunpack.i.l.bf16 %v4273_v23  ;;  %v1849_v53 = vsel %vm1825_vm5, %v1816_v7, %v2703_v56  ;;  %v1879_v21 = vsel %vm1858_vm6, %v1846_v16, %v2753_v18 }
 0x132   : > { %v1866_v10 = vsel %vm1858_vm6, %v1833_v3, %v2838_v61  ;;  %v2848_v22 = vunpack.i.h.bf16 %v4273_v23  ;;  %v1880_v57 = vsel %vm1858_vm6, %v1847_v12, %v2837_v15  ;;  %v2853_v26 = vunpack.i.h.bf16 %v4276_v14 }
 0x133   : > { %v4285_v0 = vpop.permute.xlu1 %2860  ;;  %v2852_v62 = vunpack.i.l.bf16 %v4276_v14  ;;  %v2857_v54 = vunpack.i.l.bf16 %v4279_v46  ;;  %v1881_v27 = vsel %vm1858_vm6, %v1848_v33, %v2842_v17  ;;  %v1882_v28 = vsel %vm1858_vm6, %v1849_v53, %v2843_v1 }
 0x134   : > { %v4289_v48 = vpop.permute.xlu0 %2865  ;;  %v2858_v4 = vunpack.i.h.bf16 %v4279_v46  ;;  %v2862_v58 = vunpack.i.l.bf16 %v4285_v0  ;;  %v1896_v23 = vsel %vm1891_vm7, %v4012_v52, %v2847_v43  ;;  %v2863_v25 = vunpack.i.h.bf16 %v4285_v0 }
 0x135   : > { %v2868_v59 = vunpack.i.h.bf16 %v4289_v48  ;;  %v2867_v8 = vunpack.i.l.bf16 %v4289_v48  ;;  %v1897_v30 = vsel %vm1891_vm7, %v4015_v31, %v2848_v22  ;;  %v1912_v46 = vsel %vm1891_vm7, %v1879_v21, %v2852_v62 }
 0x136   : > { %v1913_v41 = vsel %vm1891_vm7, %v1880_v57, %v2853_v26  ;;  %v1898_v52 = vsel %vm1891_vm7, %v4687_v11, %v2857_v54  ;;  %v1899_v51 = vsel %vm1891_vm7, %v1866_v10, %v2858_v4  ;;  %v1914_v48 = vsel %vm1891_vm7, %v1881_v27, %v2862_v58 }
 0x137   : > { %v2871_v9 = vpop.permute.xlu1 %2870  ;;  %v1915_v31 = vsel %vm1891_vm7, %v1882_v28, %v2863_v25  ;;  %v1929_v32 = vsel %vm1924_vm8, %v1896_v23, %v2867_v8  ;;  %v1930_v47 = vsel %vm1924_vm8, %v1897_v30, %v2868_v59 }
 0x138   : > { %v2876_v39 = vpop.permute.xlu0 %2875  ;;  %v2873_v29 = vunpack.i.h.bf16 %v2871_v9  ;;  %v2872_v2 = vunpack.i.l.bf16 %v2871_v9 }
 0x139   : > { %v2877_v35 = vunpack.i.l.bf16 %v2876_v39  ;;  %v2878_v0 = vunpack.i.h.bf16 %v2876_v39 }
 0x13a   : > { %v1945_v50 = vsel %vm1924_vm8, %v1912_v46, %v2872_v2  ;;  %v1946_v44 = vsel %vm1924_vm8, %v1913_v41, %v2873_v29 }
 0x13b   : > { %v4317_v6 = vpop.permute.xlu1 %2880  ;;  %v1931_v13 = vsel %vm1924_vm8, %v1898_v52, %v2877_v35  ;;  %v1932_v19 = vsel %vm1924_vm8, %v1899_v51, %v2878_v0 }
 0x13c   : > { %v2886_v37 = vpop.permute.xlu0 %2885  ;;  %v2883_v24 = vunpack.i.h.bf16 %v4317_v6  ;;  %v2882_v39 = vunpack.i.l.bf16 %v4317_v6 }
 0x13d   : > { %v2888_v34 = vunpack.i.h.bf16 %v2886_v37  ;;  %v2887_v55 = vunpack.i.l.bf16 %v2886_v37 }
 0x13e   : > { %v1947_v37 = vsel %vm1924_vm8, %v1914_v48, %v2882_v39  ;;  %v1948_v27 = vsel %vm1924_vm8, %v1915_v31, %v2883_v24  ;;  %v4690_v24 = vld [vmem:[#allocation29_spill] sm:$0xff] }
 0x13f   : > { %v2891_v14 = vpop.permute.xlu1 %2890  ;;  %v1962_v63 = vsel %vm1957_vm9, %v1929_v32, %v2887_v55  ;;  %v1963_v56 = vsel %vm1957_vm9, %v1930_v47, %v2888_v34 }
 0x140   : > { %v2896_v38 = vpop.permute.xlu0 %2895  ;;  %v2892_v5 = vunpack.i.l.bf16 %v2891_v14  ;;  %v2893_v45 = vunpack.i.h.bf16 %v2891_v14 }
 0x141   : > { %v2898_v18 = vunpack.i.h.bf16 %v2896_v38  ;;  %v2897_v61 = vunpack.i.l.bf16 %v2896_v38 }
 0x142   : > { %v1978_v40 = vsel %vm1957_vm9, %v1945_v50, %v2892_v5  ;;  %v1979_v49 = vsel %vm1957_vm9, %v1946_v44, %v2893_v45  ;;  %v4688_v50 = vld [vmem:[#allocation21_spill] sm:$0xff] }
 0x143   : > { %v2901_v20 = vpop.permute.xlu1 %2900  ;;  %v1964_v21 = vsel %vm1957_vm9, %v1931_v13, %v2897_v61  ;;  %v1965_v6 = vsel %vm1957_vm9, %v1932_v19, %v2898_v18  ;;  %v4689_v13 = vld [vmem:[#allocation22_spill] sm:$0xff] }
 0x144   : > { %v2906_v60 = vpop.permute.xlu0 %2905  ;;  %v2903_v12 = vunpack.i.h.bf16 %v2901_v20  ;;  %v2902_v33 = vunpack.i.l.bf16 %v2901_v20 }
 0x145   : > { %v2908_v42 = vunpack.i.h.bf16 %v2906_v60  ;;  %v2907_v9 = vunpack.i.l.bf16 %v2906_v60 }
 0x146   : > { %v1980_v25 = vsel %vm1957_vm9, %v1947_v37, %v2902_v33  ;;  %v1981_v59 = vsel %vm1957_vm9, %v1948_v27, %v2903_v12 }
 0x147   : > { %v1995_v36 = vsel %vm1990_vm10, %v1962_v63, %v2907_v9  ;;  %v1996_v7 = vsel %vm1990_vm10, %v1963_v56, %v2908_v42  ;;  %v2911_v15 = vpop.permute.xlu1 %2910  ;;  %v4691_v9 = vld [vmem:[#allocation30_spill] sm:$0xff]  ;;  %v4692_v56 = vld [vmem:[#allocation24_spill] sm:$0xff] }
 0x148   : > { %v2025_v3 = vpack.c.bf16 %v1996_v7, %v1995_v36  ;;  %v2913_v1 = vunpack.i.h.bf16 %v2911_v15  ;;  %v2912_v17 = vunpack.i.l.bf16 %v2911_v15  ;;  %v2916_v16 = vpop.permute.xlu0 %2915 }
 0x149   : > { %v2918_v43 = vunpack.i.h.bf16 %v2916_v16  ;;  %v2917_v53 = vunpack.i.l.bf16 %v2916_v16 }
 0x14a   : > { %v2011_v10 = vsel %vm1990_vm10, %v1978_v40, %v2912_v17  ;;  %v2012_v22 = vsel %vm1990_vm10, %v1979_v49, %v2913_v1  ;;  %2431 = vmatprep.mubr.msk.bf16.mxu0 %vm2066_vm11, %v2025_v3  ;;  %v4693_v40 = vld [vmem:[#allocation23_spill] sm:$0xff]  ;;  %v4695_v17 = vld [vmem:[#allocation32_spill] sm:$0xff] }
 0x14b   : > { %v2033_v57 = vpack.c.bf16 %v2012_v22, %v2011_v10  ;;  %v1997_v26 = vsel %vm1990_vm10, %v1964_v21, %v2917_v53  ;;  %v1998_v62 = vsel %vm1990_vm10, %v1965_v6, %v2918_v43  ;;  %v2921_v54 = vpop.permute.xlu1 %2920  ;;  %v4694_v3 = vld [vmem:[#allocation31_spill] sm:$0xff] }
 0x14c   : > { %v2026_v28 = vpack.c.bf16 %v1998_v62, %v1997_v26  ;;  %v2923_v4 = vunpack.i.h.bf16 %v2921_v54  ;;  %v2922_v58 = vunpack.i.l.bf16 %v2921_v54  ;;  %v2926_v23 = vpop.permute.xlu0 %2925 }
 0x14d   : > { %2447 = vmatprep.mubr.msk.bf16.mxu1 %vm2066_vm11, %v2033_v57  ;;  %v2928_v0 = vunpack.i.h.bf16 %v2926_v23  ;;  %v2927_v51 = vunpack.i.l.bf16 %v2926_v23 }
 0x14e   : > { %v2013_v8 = vsel %vm1990_vm10, %v1980_v25, %v2922_v58  ;;  %v2014_v14 = vsel %vm1990_vm10, %v1981_v59, %v2923_v4  ;;  %2432 = vmatmul.mubr.msk.bf16.gmra.mrb[4].mxu0 %vm2066_vm11, %v2026_v28 }
 0x14f   : > { %v2034_v30 = vpack.c.bf16 %v2014_v14, %v2013_v8  ;;  %v2931_v29 = vpop.permute.xlu1 %2930  ;;  %v1867_v44 = vsel %vm1858_vm6, %v4688_v50, %v2927_v51  ;;  %v1868_v45 = vsel %vm1858_vm6, %v4689_v13, %v2928_v0 }
 0x150   : > { %v2936_v2 = vpop.permute.xlu0 %2935  ;;  %v2933_v34 = vunpack.i.h.bf16 %v2931_v29  ;;  %v2932_v55 = vunpack.i.l.bf16 %v2931_v29 }
 0x151   : > { %2448 = vmatmul.mubr.msk.bf16.gmra.mrb[4].mxu1 %vm2066_vm11, %v2034_v30  ;;  %v2938_v31 = vunpack.i.h.bf16 %v2936_v2  ;;  %v2937_v47 = vunpack.i.l.bf16 %v2936_v2 }
 0x152   : > { %v1883_v42 = vsel %vm1858_vm6, %v4690_v24, %v2932_v55  ;;  %v1884_v63 = vsel %vm1858_vm6, %v4691_v9, %v2933_v34 }
 0x153   : > { %v2941_v35 = vpop.permute.xlu1 %2940  ;;  %v1870_v18 = vsel %vm1858_vm6, %v4692_v56, %v2938_v31  ;;  %v1869_v36 = vsel %vm1858_vm6, %v4693_v40, %v2937_v47 }
 0x154   : > { %v2946_v38 = vpop.permute.xlu0 %2945  ;;  %v2943_v5 = vunpack.i.h.bf16 %v2941_v35  ;;  %v2942_v20 = vunpack.i.l.bf16 %v2941_v35 }
 0x155   : > { %v2947_v60 = vunpack.i.l.bf16 %v2946_v38  ;;  %v2948_v61 = vunpack.i.h.bf16 %v2946_v38 }
 0x156   : > { %v1885_v1 = vsel %vm1858_vm6, %v4694_v3, %v2942_v20  ;;  %v1886_v16 = vsel %vm1858_vm6, %v4695_v17, %v2943_v5 }
 0x157   : > { %v2951_v46 = vpop.permute.xlu1 %2950  ;;  %v1900_v43 = vsel %vm1891_vm7, %v1867_v44, %v2947_v60  ;;  %v1901_v22 = vsel %vm1891_vm7, %v1868_v45, %v2948_v61 }
 0x158   : > { %v2956_v41 = vpop.permute.xlu0 %2955  ;;  %v2953_v7 = vunpack.i.h.bf16 %v2951_v46  ;;  %v2952_v15 = vunpack.i.l.bf16 %v2951_v46 }
 0x159   : > { %v2957_v49 = vunpack.i.l.bf16 %v2956_v41  ;;  %v2958_v12 = vunpack.i.h.bf16 %v2956_v41 }
 0x15a   : > { %v1916_v54 = vsel %vm1891_vm7, %v1883_v42, %v2952_v15  ;;  %v1917_v27 = vsel %vm1891_vm7, %v1884_v63, %v2953_v7 }
 0x15b   : > { %v2961_v11 = vpop.permute.xlu1 %2960  ;;  %v1902_v28 = vsel %vm1891_vm7, %v1869_v36, %v2957_v49  ;;  %v1903_v58 = vsel %vm1891_vm7, %v1870_v18, %v2958_v12 }
 0x15c   : > { %v2966_v52 = vpop.permute.xlu0 %2965  ;;  %v2962_v33 = vunpack.i.l.bf16 %v2961_v11  ;;  %v2963_v53 = vunpack.i.h.bf16 %v2961_v11 }
 0x15d   : > { %v2968_v21 = vunpack.i.h.bf16 %v2966_v52  ;;  %v2967_v6 = vunpack.i.l.bf16 %v2966_v52 }
 0x15e   : > { %v1918_v23 = vsel %vm1891_vm7, %v1885_v1, %v2962_v33  ;;  %v1919_v8 = vsel %vm1891_vm7, %v1886_v16, %v2963_v53 }
 0x15f   : > { %v2971_v48 = vpop.permute.xlu1 %2970  ;;  %v1933_v14 = vsel %vm1924_vm8, %v1900_v43, %v2967_v6  ;;  %v1934_v30 = vsel %vm1924_vm8, %v1901_v22, %v2968_v21 }
 0x160   : > { %v2976_v32 = vpop.permute.xlu0 %2975  ;;  %v2973_v37 = vunpack.i.h.bf16 %v2971_v48  ;;  %v2972_v57 = vunpack.i.l.bf16 %v2971_v48 }
 0x161   : > { %v2977_v26 = vunpack.i.l.bf16 %v2976_v32  ;;  %v2978_v4 = vunpack.i.h.bf16 %v2976_v32 }
 0x162   : > { %v1949_v35 = vsel %vm1924_vm8, %v1916_v54, %v2972_v57  ;;  %v1950_v38 = vsel %vm1924_vm8, %v1917_v27, %v2973_v37 }
 0x163   : > { %v4379_v19 = vpop.permute.xlu1 %2980  ;;  %v1935_v46 = vsel %vm1924_vm8, %v1902_v28, %v2977_v26  ;;  %v1936_v52 = vsel %vm1924_vm8, %v1903_v58, %v2978_v4 }
 0x164   : > { %v2986_v39 = vpop.permute.xlu0 %2985  ;;  %v2983_v0 = vunpack.i.h.bf16 %v4379_v19  ;;  %v2982_v47 = vunpack.i.l.bf16 %v4379_v19 }
 0x165   : > { %v2988_v25 = vunpack.i.h.bf16 %v2986_v39  ;;  %v2987_v59 = vunpack.i.l.bf16 %v2986_v39 }
 0x166   : > { %v1951_v36 = vsel %vm1924_vm8, %v1918_v23, %v2982_v47  ;;  %v1952_v1 = vsel %vm1924_vm8, %v1919_v8, %v2983_v0  ;;  %v4698_v0 = vld [vmem:[#allocation33_spill] sm:$0xff] }
 0x167   : > { %v2991_v10 = vpop.permute.xlu1 %2990  ;;  %v1966_v34 = vsel %vm1957_vm9, %v1933_v14, %v2987_v59  ;;  %v1967_v55 = vsel %vm1957_vm9, %v1934_v30, %v2988_v25 }
 0x168   : > { %v2996_v62 = vpop.permute.xlu0 %2995  ;;  %v2992_v29 = vunpack.i.l.bf16 %v2991_v10  ;;  %v2993_v41 = vunpack.i.h.bf16 %v2991_v10 }
 0x169   : > { %v2998_v31 = vunpack.i.h.bf16 %v2996_v62  ;;  %v2997_v32 = vunpack.i.l.bf16 %v2996_v62 }
 0x16a   : > { %v1982_v5 = vsel %vm1957_vm9, %v1949_v35, %v2992_v29  ;;  %v1983_v13 = vsel %vm1957_vm9, %v1950_v38, %v2993_v41  ;;  %v4696_v35 = vld [vmem:[#allocation25_spill] sm:$0xff] }
 0x16b   : > { %v3001_v2 = vpop.permute.xlu1 %3000  ;;  %v1968_v61 = vsel %vm1957_vm9, %v1935_v46, %v2997_v32  ;;  %v1969_v19 = vsel %vm1957_vm9, %v1936_v52, %v2998_v31  ;;  %v4697_v46 = vld [vmem:[#allocation26_spill] sm:$0xff] }
 0x16c   : > { %v3006_v11 = vpop.permute.xlu0 %3005  ;;  %v3003_v9 = vunpack.i.h.bf16 %v3001_v2  ;;  %v3002_v63 = vunpack.i.l.bf16 %v3001_v2 }
 0x16d   : > { %v3008_v51 = vunpack.i.h.bf16 %v3006_v11  ;;  %v3007_v48 = vunpack.i.l.bf16 %v3006_v11 }
 0x16e   : > { %v1984_v43 = vsel %vm1957_vm9, %v1951_v36, %v3002_v63  ;;  %v1985_v53 = vsel %vm1957_vm9, %v1952_v1, %v3003_v9 }
 0x16f   : > { %v1999_v20 = vsel %vm1990_vm10, %v1966_v34, %v3007_v48  ;;  %v2000_v50 = vsel %vm1990_vm10, %v1967_v55, %v3008_v51  ;;  %v3011_v44 = vpop.permute.xlu1 %3010  ;;  %v4699_v48 = vld [vmem:[#allocation34_spill] sm:$0xff]  ;;  %v4700_v55 = vld [vmem:[#allocation28_spill] sm:$0xff] }
 0x170   : > { %v2027_v45 = vpack.c.bf16 %v2000_v50, %v1999_v20  ;;  %v3013_v60 = vunpack.i.h.bf16 %v3011_v44  ;;  %v3012_v24 = vunpack.i.l.bf16 %v3011_v44  ;;  %v3016_v42 = vpop.permute.xlu0 %3015 }
 0x171   : > { %v3018_v56 = vunpack.i.h.bf16 %v3016_v42  ;;  %v3017_v18 = vunpack.i.l.bf16 %v3016_v42 }
 0x172   : > { %v2015_v39 = vsel %vm1990_vm10, %v1982_v5, %v3012_v24  ;;  %v2016_v40 = vsel %vm1990_vm10, %v1983_v13, %v3013_v60  ;;  %2435 = vmatprep.mubr.msk.bf16.mxu0 %vm2066_vm11, %v2027_v45  ;;  %v4701_v5 = vld [vmem:[#allocation27_spill] sm:$0xff]  ;;  %v4703_v24 = vld [vmem:[#allocation36_spill] sm:$0xff] }
 0x173   : > { %v2035_v7 = vpack.c.bf16 %v2016_v40, %v2015_v39  ;;  %v2001_v15 = vsel %vm1990_vm10, %v1968_v61, %v3017_v18  ;;  %v2002_v49 = vsel %vm1990_vm10, %v1969_v19, %v3018_v56  ;;  %v3021_v3 = vpop.permute.xlu1 %3020  ;;  %v4702_v45 = vld [vmem:[#allocation35_spill] sm:$0xff] }
 0x174   : > { %v2028_v17 = vpack.c.bf16 %v2002_v49, %v2001_v15  ;;  %v3023_v16 = vunpack.i.h.bf16 %v3021_v3  ;;  %v3022_v12 = vunpack.i.l.bf16 %v3021_v3  ;;  %v3026_v33 = vpop.permute.xlu0 %3025 }
 0x175   : > { %2451 = vmatprep.mubr.msk.bf16.mxu1 %vm2066_vm11, %v2035_v7  ;;  %v3028_v4 = vunpack.i.h.bf16 %v3026_v33  ;;  %v3027_v58 = vunpack.i.l.bf16 %v3026_v33 }
 0x176   : > { %v2017_v21 = vsel %vm1990_vm10, %v1984_v43, %v3022_v12  ;;  %v2018_v6 = vsel %vm1990_vm10, %v1985_v53, %v3023_v16  ;;  %2436 = vmatmul.mubr.msk.bf16.gmra.mrb[8].mxu0 %vm2066_vm11, %v2028_v17 }
 0x177   : > { %v2036_v10 = vpack.c.bf16 %v2018_v6, %v2017_v21  ;;  %v3031_v22 = vpop.permute.xlu1 %3030  ;;  %v1871_v38 = vsel %vm1858_vm6, %v4696_v35, %v3027_v58  ;;  %v1872_v41 = vsel %vm1858_vm6, %v4697_v46, %v3028_v4 }
 0x178   : > { %v3036_v37 = vpop.permute.xlu0 %3035  ;;  %v3033_v25 = vunpack.i.h.bf16 %v3031_v22  ;;  %v3032_v59 = vunpack.i.l.bf16 %v3031_v22 }
 0x179   : > { %2452 = vmatmul.mubr.msk.bf16.gmra.mrb[8].mxu1 %vm2066_vm11, %v2036_v10  ;;  %v3038_v8 = vunpack.i.h.bf16 %v3036_v37  ;;  %v3037_v30 = vunpack.i.l.bf16 %v3036_v37 }
 0x17a   : > { %v1887_v51 = vsel %vm1858_vm6, %v4698_v0, %v3032_v59  ;;  %v1888_v34 = vsel %vm1858_vm6, %v4699_v48, %v3033_v25 }
 0x17b   : > { %v3041_v57 = vpop.permute.xlu1 %3040  ;;  %v1874_v31 = vsel %vm1858_vm6, %v4700_v55, %v3038_v8  ;;  %v1873_v20 = vsel %vm1858_vm6, %v4701_v5, %v3037_v30 }
 0x17c   : > { %v3046_v26 = vpop.permute.xlu0 %3045  ;;  %v3043_v29 = vunpack.i.h.bf16 %v3041_v57  ;;  %v3042_v2 = vunpack.i.l.bf16 %v3041_v57 }
 0x17d   : > { %v3047_v11 = vunpack.i.l.bf16 %v3046_v26  ;;  %v3048_v32 = vunpack.i.h.bf16 %v3046_v26 }
 0x17e   : > { %v1889_v60 = vsel %vm1858_vm6, %v4702_v45, %v3042_v2  ;;  %v1890_v42 = vsel %vm1858_vm6, %v4703_v24, %v3043_v29 }
 0x17f   : > { %v3051_v62 = vpop.permute.xlu1 %3050  ;;  %v1904_v56 = vsel %vm1891_vm7, %v1871_v38, %v3047_v11  ;;  %v1905_v40 = vsel %vm1891_vm7, %v1872_v41, %v3048_v32 }
 0x180   : > { %v3056_v54 = vpop.permute.xlu0 %3055  ;;  %v3053_v50 = vunpack.i.h.bf16 %v3051_v62  ;;  %v3052_v44 = vunpack.i.l.bf16 %v3051_v62 }
 0x181   : > { %v3057_v13 = vunpack.i.l.bf16 %v3056_v54  ;;  %v3058_v9 = vunpack.i.h.bf16 %v3056_v54 }
 0x182   : > { %v1920_v3 = vsel %vm1891_vm7, %v1887_v51, %v3052_v44  ;;  %v1921_v1 = vsel %vm1891_vm7, %v1888_v34, %v3053_v50 }
 0x183   : > { %v3061_v27 = vpop.permute.xlu1 %3060  ;;  %v1906_v17 = vsel %vm1891_vm7, %v1873_v20, %v3057_v13  ;;  %v1907_v12 = vsel %vm1891_vm7, %v1874_v31, %v3058_v9 }
 0x184   : > { %v3066_v28 = vpop.permute.xlu0 %3065  ;;  %v3062_v63 = vunpack.i.l.bf16 %v3061_v27  ;;  %v3063_v18 = vunpack.i.h.bf16 %v3061_v27 }
 0x185   : > { %v3068_v61 = vunpack.i.h.bf16 %v3066_v28  ;;  %v3067_v19 = vunpack.i.l.bf16 %v3066_v28 }
 0x186   : > { %v1922_v33 = vsel %vm1891_vm7, %v1889_v60, %v3062_v63  ;;  %v1923_v21 = vsel %vm1891_vm7, %v1890_v42, %v3063_v18 }
 0x187   : > { %v3071_v23 = vpop.permute.xlu1 %3070  ;;  %v1937_v6 = vsel %vm1924_vm8, %v1904_v56, %v3067_v19  ;;  %v1938_v10 = vsel %vm1924_vm8, %v1905_v40, %v3068_v61 }
 0x188   : > { %v3076_v14 = vpop.permute.xlu0 %3075  ;;  %v3073_v36 = vunpack.i.h.bf16 %v3071_v23  ;;  %v3072_v7 = vunpack.i.l.bf16 %v3071_v23 }
 0x189   : > { %v3077_v15 = vunpack.i.l.bf16 %v3076_v14  ;;  %v3078_v16 = vunpack.i.h.bf16 %v3076_v14 }
 0x18a   : > { %v1953_v57 = vsel %vm1924_vm8, %v1920_v3, %v3072_v7  ;;  %v1954_v26 = vsel %vm1924_vm8, %v1921_v1, %v3073_v36 }
 0x18b   : > { %v4435_v52 = vpop.permute.xlu1 %3080  ;;  %v1939_v62 = vsel %vm1924_vm8, %v1906_v17, %v3077_v15  ;;  %v1940_v28 = vsel %vm1924_vm8, %v1907_v12, %v3078_v16 }
 0x18c   : > { %v3086_v47 = vpop.permute.xlu0 %3085  ;;  %v3083_v4 = vunpack.i.h.bf16 %v4435_v52  ;;  %v3082_v30 = vunpack.i.l.bf16 %v4435_v52 }
 0x18d   : > { %v3088_v43 = vunpack.i.h.bf16 %v3086_v47  ;;  %v3087_v53 = vunpack.i.l.bf16 %v3086_v47 }
 0x18e   : > { %v1955_v20 = vsel %vm1924_vm8, %v1922_v33, %v3082_v30  ;;  %v1956_v60 = vsel %vm1924_vm8, %v1923_v21, %v3083_v4 }
 0x18f   : > { %v3091_v39 = vpop.permute.xlu1 %3090  ;;  %v1970_v25 = vsel %vm1957_vm9, %v1937_v6, %v3087_v53  ;;  %v1971_v59 = vsel %vm1957_vm9, %v1938_v10, %v3088_v43 }
 0x190   : > { %v3096_v49 = vpop.permute.xlu0 %3095  ;;  %v3092_v22 = vunpack.i.l.bf16 %v3091_v39  ;;  %v3093_v54 = vunpack.i.h.bf16 %v3091_v39  ;;  %v4490_v39 = vld [vmem:[%s4602_s4] ss:$0 sm:$0xff] }
 0x191   : > { %v3098_v8 = vunpack.i.h.bf16 %v3096_v49  ;;  %v3097_v14 = vunpack.i.l.bf16 %v3096_v49 }
 0x192   : > { %v1986_v29 = vsel %vm1957_vm9, %v1953_v57, %v3092_v22  ;;  %v1987_v46 = vsel %vm1957_vm9, %v1954_v26, %v3093_v54 }
 0x193   : > { %v3101_v37 = vpop.permute.xlu1 %3100  ;;  %v1972_v32 = vsel %vm1957_vm9, %v1939_v62, %v3097_v14  ;;  %v1973_v52 = vsel %vm1957_vm9, %v1940_v28, %v3098_v8 }
 0x194   : > { %v3106_v27 = vpop.permute.xlu0 %3105  ;;  %v3103_v48 = vunpack.i.h.bf16 %v3101_v37  ;;  %v3102_v34 = vunpack.i.l.bf16 %v3101_v37 }
 0x195   : > { %v3108_v58 = vunpack.i.h.bf16 %v3106_v27  ;;  %v3107_v23 = vunpack.i.l.bf16 %v3106_v27 }
 0x196   : > { %v1988_v63 = vsel %vm1957_vm9, %v1955_v20, %v3102_v34  ;;  %v1989_v56 = vsel %vm1957_vm9, %v1956_v60, %v3103_v48 }
 0x197   : > { %v2003_v2 = vsel %vm1990_vm10, %v1970_v25, %v3107_v23  ;;  %v2004_v35 = vsel %vm1990_vm10, %v1971_v59, %v3108_v58  ;;  %v3111_v38 = vpop.permute.xlu1 %3110 }
 0x198   : > { %v2029_v41 = vpack.c.bf16 %v2004_v35, %v2003_v2  ;;  %v3113_v11 = vunpack.i.h.bf16 %v3111_v38  ;;  %v3112_v0 = vunpack.i.l.bf16 %v3111_v38  ;;  %v3116_v51 = vpop.permute.xlu0 %3115 }
 0x199   : > { %v3118_v55 = vunpack.i.h.bf16 %v3116_v51  ;;  %v3117_v31 = vunpack.i.l.bf16 %v3116_v51 }
 0x19a   : > { %v2019_v47 = vsel %vm1990_vm10, %v1986_v29, %v3112_v0  ;;  %v2020_v5 = vsel %vm1990_vm10, %v1987_v46, %v3113_v11  ;;  %2439 = vmatprep.mubr.msk.bf16.mxu0 %vm2066_vm11, %v2029_v41 }
 0x19b   : > { %v2037_v50 = vpack.c.bf16 %v2020_v5, %v2019_v47  ;;  %v2005_v44 = vsel %vm1990_vm10, %v1972_v32, %v3117_v31  ;;  %v2006_v13 = vsel %vm1990_vm10, %v1973_v52, %v3118_v55  ;;  %v3121_v45 = vpop.permute.xlu1 %3120 }
 0x19c   : > { %v2030_v24 = vpack.c.bf16 %v2006_v13, %v2005_v44  ;;  %v3123_v42 = vunpack.i.h.bf16 %v3121_v45  ;;  %v3122_v9 = vunpack.i.l.bf16 %v3121_v45 }
 0x19d   : > { %2455 = vmatprep.mubr.msk.bf16.mxu1 %vm2066_vm11, %v2037_v50 }
 0x19e   : > { %v2021_v18 = vsel %vm1990_vm10, %v1988_v63, %v3122_v9  ;;  %v2022_v61 = vsel %vm1990_vm10, %v1989_v56, %v3123_v42  ;;  %2440 = vmatmul.mubr.msk.bf16.gmra.mrb[12].mxu0 %vm2066_vm11, %v2030_v24 }
 0x19f   : > { %v2038_v19 = vpack.c.bf16 %v2022_v61, %v2021_v18 }
 0x1a1   : > { %2456 = vmatmul.mubr.msk.bf16.gmra.mrb[12].mxu1 %vm2066_vm11, %v2038_v19 }
 0x1fd   : > { %v2429_v40 = vpop.f32.mrb[0].mxu0 }
 0x1fe   : > { %v2162_v36 = vadd.f32 %v2429_v40, %v4490_v39  ;;  %v2153_v7 = vpop.f32.mrb[1].mxu0 }
 0x1ff   : > { %v2154_v15 = vadd.f32 %v4490_v39, %v2153_v7  ;;  %v2430_v49 = vpop.f32.mrb[2].mxu0 }
 0x200   : > { %2282 = vst.msk [vmem:[%s4497_s25 + $0x10] sm:$0xff] %vm1792_vm4, %v2162_v36  ;;  %v2165_v3 = vadd.f32 %v2430_v49, %v4490_v39  ;;  %v2156_v1 = vpop.f32.mrb[3].mxu0  ;;  %v2445_v17 = vpop.f32.mrb[0].mxu1 }
 0x201   : > { %2280 = vst.msk [vmem:[%s4497_s25] sm:$0xff] %vm1792_vm4, %v2154_v15  ;;  %v2157_v16 = vadd.f32 %v4490_v39, %v2156_v1  ;;  %v2226_v12 = vadd.f32 %v2445_v17, %v4490_v39  ;;  %v2217_v33 = vpop.f32.mrb[1].mxu1 }
 0x202   : > { %2283 = vst.msk [vmem:[%s4497_s25 + $0x18] sm:$0xff] %vm1792_vm4, %v2165_v3  ;;  %v2218_v43 = vadd.f32 %v4490_v39, %v2217_v33  ;;  %v2446_v53 = vpop.f32.mrb[2].mxu1 }
 0x203   : > { %2281 = vst.msk [vmem:[%s4497_s25 + $0x8] sm:$0xff] %vm1792_vm4, %v2157_v16  ;;  %2298 = vst.msk [vmem:[%s4497_s25 + $0x90] sm:$0xff] %vm1792_vm4, %v2226_v12  ;;  %v2229_v21 = vadd.f32 %v2446_v53, %v4490_v39  ;;  %v2220_v6 = vpop.f32.mrb[3].mxu1 }
 0x204   : > { %2296 = vst.msk [vmem:[%s4497_s25 + $0x80] sm:$0xff] %vm1792_vm4, %v2218_v43  ;;  %v2221_v10 = vadd.f32 %v4490_v39, %v2220_v6 }
 0x205   : > { %2299 = vst.msk [vmem:[%s4497_s25 + $0x98] sm:$0xff] %vm1792_vm4, %v2229_v21 }
 0x206   : > { %2297 = vst.msk [vmem:[%s4497_s25 + $0x88] sm:$0xff] %vm1792_vm4, %v2221_v10 }
 0x221   : > { %v2433_v22 = vpop.f32.mrb[4].mxu0 }
 0x222   : > { %v2178_v37 = vadd.f32 %v2433_v22, %v4490_v39  ;;  %v2169_v57 = vpop.f32.mrb[5].mxu0 }
 0x223   : > { %v2170_v26 = vadd.f32 %v4490_v39, %v2169_v57  ;;  %v2434_v62 = vpop.f32.mrb[6].mxu0 }
 0x224   : > { %2286 = vst.msk [vmem:[%s4497_s25 + $0x30] sm:$0xff] %vm1792_vm4, %v2178_v37  ;;  %v2181_v54 = vadd.f32 %v2434_v62, %v4490_v39  ;;  %v2172_v27 = vpop.f32.mrb[7].mxu0  ;;  %v2449_v28 = vpop.f32.mrb[4].mxu1 }
 0x225   : > { %2284 = vst.msk [vmem:[%s4497_s25 + $0x20] sm:$0xff] %vm1792_vm4, %v2170_v26  ;;  %v2173_v4 = vadd.f32 %v4490_v39, %v2172_v27  ;;  %v2242_v58 = vadd.f32 %v2449_v28, %v4490_v39  ;;  %v2233_v23 = vpop.f32.mrb[5].mxu1 }
 0x226   : > { %2287 = vst.msk [vmem:[%s4497_s25 + $0x38] sm:$0xff] %vm1792_vm4, %v2181_v54  ;;  %v2234_v25 = vadd.f32 %v4490_v39, %v2233_v23  ;;  %v2450_v59 = vpop.f32.mrb[6].mxu1 }
 0x227   : > { %2285 = vst.msk [vmem:[%s4497_s25 + $0x28] sm:$0xff] %vm1792_vm4, %v2173_v4  ;;  %2302 = vst.msk [vmem:[%s4497_s25 + $0xb0] sm:$0xff] %vm1792_vm4, %v2242_v58  ;;  %v2245_v8 = vadd.f32 %v2450_v59, %v4490_v39  ;;  %v2236_v14 = vpop.f32.mrb[7].mxu1 }
 0x228   : > { %2300 = vst.msk [vmem:[%s4497_s25 + $0xa0] sm:$0xff] %vm1792_vm4, %v2234_v25  ;;  %v2237_v30 = vadd.f32 %v4490_v39, %v2236_v14 }
 0x229   : > { %2303 = vst.msk [vmem:[%s4497_s25 + $0xb8] sm:$0xff] %vm1792_vm4, %v2245_v8 }
 0x22a   : > { %2301 = vst.msk [vmem:[%s4497_s25 + $0xa8] sm:$0xff] %vm1792_vm4, %v2237_v30 }
 0x249   : > { %v2437_v29 = vpop.f32.mrb[8].mxu0 }
 0x24a   : > { %v2194_v2 = vadd.f32 %v2437_v29, %v4490_v39  ;;  %v2185_v35 = vpop.f32.mrb[9].mxu0 }
 0x24b   : > { %v2186_v38 = vadd.f32 %v4490_v39, %v2185_v35  ;;  %v2438_v46 = vpop.f32.mrb[10].mxu0 }
 0x24c   : > { %2290 = vst.msk [vmem:[%s4497_s25 + $0x50] sm:$0xff] %vm1792_vm4, %v2194_v2  ;;  %v2197_v41 = vadd.f32 %v2438_v46, %v4490_v39  ;;  %v2188_v11 = vpop.f32.mrb[11].mxu0  ;;  %v2453_v0 = vpop.f32.mrb[8].mxu1 }
 0x24d   : > { %2288 = vst.msk [vmem:[%s4497_s25 + $0x40] sm:$0xff] %vm1792_vm4, %v2186_v38  ;;  %v2189_v51 = vadd.f32 %v4490_v39, %v2188_v11  ;;  %v2258_v48 = vadd.f32 %v2453_v0, %v4490_v39  ;;  %v2249_v34 = vpop.f32.mrb[9].mxu1 }
 0x24e   : > { %2291 = vst.msk [vmem:[%s4497_s25 + $0x58] sm:$0xff] %vm1792_vm4, %v2197_v41  ;;  %v2250_v55 = vadd.f32 %v4490_v39, %v2249_v34  ;;  %v2454_v31 = vpop.f32.mrb[10].mxu1 }
 0x24f   : > { %2289 = vst.msk [vmem:[%s4497_s25 + $0x48] sm:$0xff] %vm1792_vm4, %v2189_v51  ;;  %2306 = vst.msk [vmem:[%s4497_s25 + $0xd0] sm:$0xff] %vm1792_vm4, %v2258_v48  ;;  %v2261_v32 = vadd.f32 %v2454_v31, %v4490_v39  ;;  %v2252_v52 = vpop.f32.mrb[11].mxu1 }
 0x250   : > { %2304 = vst.msk [vmem:[%s4497_s25 + $0xc0] sm:$0xff] %vm1792_vm4, %v2250_v55  ;;  %v2253_v47 = vadd.f32 %v4490_v39, %v2252_v52 }
 0x251   : > { %2307 = vst.msk [vmem:[%s4497_s25 + $0xd8] sm:$0xff] %vm1792_vm4, %v2261_v32 }
 0x252   : > { %2305 = vst.msk [vmem:[%s4497_s25 + $0xc8] sm:$0xff] %vm1792_vm4, %v2253_v47 }
 0x271   : > { %v2441_v5 = vpop.f32.mrb[12].mxu0 }
 0x272   : > { %v2210_v20 = vadd.f32 %v2441_v5, %v4490_v39  ;;  %v2201_v50 = vpop.f32.mrb[13].mxu0 }
 0x273   : > { %v2202_v44 = vadd.f32 %v4490_v39, %v2201_v50  ;;  %v2442_v13 = vpop.f32.mrb[14].mxu0 }
 0x274   : > { %2294 = vst.msk [vmem:[%s4497_s25 + $0x70] sm:$0xff] %vm1792_vm4, %v2210_v20  ;;  %v2213_v45 = vadd.f32 %v2442_v13, %v4490_v39  ;;  %v2204_v60 = vpop.f32.mrb[15].mxu0  ;;  %v2457_v24 = vpop.f32.mrb[12].mxu1 }
 0x275   : > { %2292 = vst.msk [vmem:[%s4497_s25 + $0x60] sm:$0xff] %vm1792_vm4, %v2202_v44  ;;  %v2205_v42 = vadd.f32 %v4490_v39, %v2204_v60  ;;  %v2274_v9 = vadd.f32 %v2457_v24, %v4490_v39  ;;  %v2265_v63 = vpop.f32.mrb[13].mxu1 }
 0x276   : > { %2295 = vst.msk [vmem:[%s4497_s25 + $0x78] sm:$0xff] %vm1792_vm4, %v2213_v45  ;;  %v2266_v56 = vadd.f32 %v4490_v39, %v2265_v63  ;;  %v2458_v18 = vpop.f32.mrb[14].mxu1 }
 0x277   : > { %2293 = vst.msk [vmem:[%s4497_s25 + $0x68] sm:$0xff] %vm1792_vm4, %v2205_v42  ;;  %2310 = vst.msk [vmem:[%s4497_s25 + $0xf0] sm:$0xff] %vm1792_vm4, %v2274_v9  ;;  %v2277_v61 = vadd.f32 %v2458_v18, %v4490_v39  ;;  %v2268_v19 = vpop.f32.mrb[15].mxu1 }
 0x278   : > { %2308 = vst.msk [vmem:[%s4497_s25 + $0xe0] sm:$0xff] %vm1792_vm4, %v2266_v56  ;;  %v2269_v40 = vadd.f32 %v4490_v39, %v2268_v19 }
 0x279   : > { %2311 = vst.msk [vmem:[%s4497_s25 + $0xf8] sm:$0xff] %vm1792_vm4, %v2277_v61 }
 0x27a   : > { %2309 = vst.msk [vmem:[%s4497_s25 + $0xe8] sm:$0xff] %vm1792_vm4, %v2269_v40 }
 0x27b PF: > { %s15_s18 = sadd.s32 1, %s3138_s18  }
 0x27c   : > { %p12_p4 = scmp.ge.s32.totalorder %s15_s18, 4  }
 0x27e   :  { %14 = sbr.rel (!%p12_p4) target bundleno = 1 (0x1), region = 73 }

</bundles_post_ra>
